<compile_context>
chip_gen: v7x
topology: tpu7x:2x2x1
jax: 0.10.0
libtpu: 0.0.40
codegen_flags: <defaults>
</compile_context>

<pallas_src>
import functools
import math

import jax
import jax.numpy as jnp
from jax.experimental import pallas as pl
from jax.experimental.pallas import tpu as pltpu

VMEM_LIMIT = 32 * 1024 * 1024
K_SPLIT_THRESHOLD = 2048     # above this, add a K-reduction grid axis
K_SPLIT_TARGET = 1536        # target K tile when splitting


def _round_up(x, m):
    return ((x + m - 1) // m) * m


def _pick_tm(m, k):
    """Shape-aware M tile: single minimal tile for small maps, big tiles for
    the huge tiny-K share-feature / stem convs."""
    m128 = _round_up(m, 128)
    if m128 <= 1024:
        return _round_up(m, 8)          # single tile, minimal sublane padding
    base = 2048 if k <= 96 else 512
    return min(base, m128)


def _split_k(k):
    if k <= K_SPLIT_THRESHOLD:
        return 1, k
    nk = -(-k // K_SPLIT_TARGET)
    tk = _round_up(-(-k // nk), 128)
    return nk, tk


# ----------------------------------------------------------------------------
# Fused matmul (+shift +optional residual +activation) kernel
# ----------------------------------------------------------------------------
def _apply_act(y, act, alpha):
    if act == "relu":
        return jnp.maximum(y, 0.0)
    if act == "leaky":
        return jnp.where(y >= 0.0, y, jnp.float32(alpha) * y)
    return y


def _make_mm_kernel(act, alpha, has_res, k_tiled):
    def kernel(*refs):
        if k_tiled:
            if has_res:
                x_ref, w_ref, b_ref, r_ref, o_ref, acc_ref = refs
            else:
                x_ref, w_ref, b_ref, o_ref, acc_ref = refs
            kidx = pl.program_id(2)

            @pl.when(kidx == 0)
            def _():
                acc_ref[...] = jnp.zeros_like(acc_ref)

            acc_ref[...] += jnp.dot(x_ref[...], w_ref[...],
                                    preferred_element_type=jnp.float32)

            @pl.when(kidx == pl.num_programs(2) - 1)
            def _():
                y = acc_ref[...] + b_ref[...]
                if has_res:
                    y = y + r_ref[...]
                o_ref[...] = _apply_act(y, act, alpha)
        else:
            if has_res:
                x_ref, w_ref, b_ref, r_ref, o_ref = refs
            else:
                x_ref, w_ref, b_ref, o_ref = refs
            y = jnp.dot(x_ref[...], w_ref[...],
                        preferred_element_type=jnp.float32) + b_ref[...]
            if has_res:
                y = y + r_ref[...]
            o_ref[...] = _apply_act(y, act, alpha)
    return kernel


@functools.lru_cache(maxsize=None)
def _conv_mm_call(mp, kp, cout, tm, tn, nk, act, alpha, has_res):
    tk = kp // nk
    kernel = _make_mm_kernel(act, alpha, has_res, nk > 1)

    if nk > 1:
        x_map = lambda i, j, k: (i, k)
        w_map = lambda i, j, k: (k, j)
        b_map = lambda i, j, k: (0, j)
        o_map = lambda i, j, k: (i, j)
        grid = (mp // tm, cout // tn, nk)
        sem = ("parallel", "parallel", "arbitrary")
        scratch = [pltpu.VMEM((tm, tn), jnp.float32)]
    else:
        x_map = lambda i, j: (i, 0)
        w_map = lambda i, j: (0, j)
        b_map = lambda i, j: (0, j)
        o_map = lambda i, j: (i, j)
        grid = (mp // tm, cout // tn)
        sem = ("parallel", "parallel")
        scratch = []

    in_specs = [pl.BlockSpec((tm, tk), x_map),
                pl.BlockSpec((tk, tn), w_map),
                pl.BlockSpec((1, tn), b_map)]
    if has_res:
        in_specs.append(pl.BlockSpec((tm, tn), o_map))

    return jax.jit(pl.pallas_call(
        kernel,
        out_shape=jax.ShapeDtypeStruct((mp, cout), jnp.float32),
        grid_spec=pltpu.PrefetchScalarGridSpec(
            num_scalar_prefetch=0,
            grid=grid,
            in_specs=in_specs,
            out_specs=pl.BlockSpec((tm, tn), o_map),
            scratch_shapes=scratch),
        compiler_params=pltpu.CompilerParams(
            dimension_semantics=sem,
            vmem_limit_bytes=VMEM_LIMIT),
    ))


# ----------------------------------------------------------------------------
# Other Pallas kernels: batched matmul, L1 norm, max-reduce, GAP, grouped conv
# ----------------------------------------------------------------------------
def _bmm_kernel(a_ref, b_ref, o_ref):
    o_ref[0] = jnp.dot(a_ref[0], b_ref[0], preferred_element_type=jnp.float32)


@functools.lru_cache(maxsize=None)
def _bmm_call(bsz, m, k, n):
    return jax.jit(pl.pallas_call(
        _bmm_kernel,
        out_shape=jax.ShapeDtypeStruct((bsz, m, n), jnp.float32),
        grid_spec=pltpu.PrefetchScalarGridSpec(
            num_scalar_prefetch=0,
            grid=(bsz,),
            in_specs=[pl.BlockSpec((1, m, k), lambda b: (b, 0, 0)),
                      pl.BlockSpec((1, k, n), lambda b: (b, 0, 0))],
            out_specs=pl.BlockSpec((1, m, n), lambda b: (b, 0, 0)),
        ),
        compiler_params=pltpu.CompilerParams(
            dimension_semantics=("parallel",),
            vmem_limit_bytes=VMEM_LIMIT),
    ))


def _l1_norm_kernel(v_ref, o_ref):
    v = v_ref[...]
    o_ref[...] = v / (1e-6 + jnp.sum(jnp.abs(v), axis=-1, keepdims=True))


@functools.lru_cache(maxsize=None)
def _l1_norm_call(bsz, k, hw):
    return jax.jit(pl.pallas_call(
        _l1_norm_kernel,
        out_shape=jax.ShapeDtypeStruct((bsz, k, hw), jnp.float32),
        grid_spec=pltpu.PrefetchScalarGridSpec(
            num_scalar_prefetch=0,
            grid=(1,),
            in_specs=[pl.BlockSpec((bsz, k, hw), lambda i: (0, 0, 0))],
            out_specs=pl.BlockSpec((bsz, k, hw), lambda i: (0, 0, 0)),
        ),
        compiler_params=pltpu.CompilerParams(
            dimension_semantics=("arbitrary",),
            vmem_limit_bytes=VMEM_LIMIT),
    ))


def _max9_kernel(x_ref, o_ref):
    o_ref[...] = jnp.max(x_ref[...], axis=0)


@functools.lru_cache(maxsize=None)
def _max9_call(rows_p, tr):
    return jax.jit(pl.pallas_call(
        _max9_kernel,
        out_shape=jax.ShapeDtypeStruct((rows_p, 128), jnp.float32),
        grid_spec=pltpu.PrefetchScalarGridSpec(
            num_scalar_prefetch=0,
            grid=(rows_p // tr,),
            in_specs=[pl.BlockSpec((9, tr, 128), lambda i: (0, i, 0))],
            out_specs=pl.BlockSpec((tr, 128), lambda i: (i, 0)),
        ),
        compiler_params=pltpu.CompilerParams(
            dimension_semantics=("parallel",),
            vmem_limit_bytes=VMEM_LIMIT),
    ))


def _gap_kernel(x_ref, o_ref):
    o_ref[...] = jnp.mean(x_ref[...], axis=1)


@functools.lru_cache(maxsize=None)
def _gap_call(n, hw, c):
    return jax.jit(pl.pallas_call(
        _gap_kernel,
        out_shape=jax.ShapeDtypeStruct((n, c), jnp.float32),
        grid_spec=pltpu.PrefetchScalarGridSpec(
            num_scalar_prefetch=0,
            grid=(1,),
            in_specs=[pl.BlockSpec((n, hw, c), lambda i: (0, 0, 0))],
            out_specs=pl.BlockSpec((n, c), lambda i: (0, 0)),
        ),
        compiler_params=pltpu.CompilerParams(
            dimension_semantics=("arbitrary",),
            vmem_limit_bytes=VMEM_LIMIT),
    ))


def _group_conv_kernel(x_ref, w_ref, o_ref):
    # grouped 1x1 conv: out[m, g] = sum_k x[m, g, k] * w[g, k]  (pure VPU/XLU)
    o_ref[...] = jnp.sum(x_ref[...] * w_ref[...][None, :, :], axis=-1)


@functools.lru_cache(maxsize=None)
def _group_conv_call(mp, g, gs):
    return jax.jit(pl.pallas_call(
        _group_conv_kernel,
        out_shape=jax.ShapeDtypeStruct((mp, g), jnp.float32),
        grid_spec=pltpu.PrefetchScalarGridSpec(
            num_scalar_prefetch=0,
            grid=(1,),
            in_specs=[pl.BlockSpec((mp, g, gs), lambda i: (0, 0, 0)),
                      pl.BlockSpec((g, gs), lambda i: (0, 0))],
            out_specs=pl.BlockSpec((mp, g), lambda i: (0, 0)),
        ),
        compiler_params=pltpu.CompilerParams(
            dimension_semantics=("arbitrary",),
            vmem_limit_bytes=VMEM_LIMIT),
    ))


# ----------------------------------------------------------------------------
# Glue: im2col, conv wrapper, pooling, subspace projection, DLT
# ----------------------------------------------------------------------------
def _im2col(x, kh, kw, stride, padding, dilation=1):
    n, h, w, c = x.shape
    ho = (h + 2 * padding - dilation * (kh - 1) - 1) // stride + 1
    wo = (w + 2 * padding - dilation * (kw - 1) - 1) // stride + 1
    xp = jnp.pad(x, ((0, 0), (padding, padding), (padding, padding), (0, 0)))
    patches = []
    for i in range(kh):
        for j in range(kw):
            hi, wj = i * dilation, j * dilation
            patches.append(jax.lax.slice(
                xp, (0, hi, wj, 0),
                (n, hi + (ho - 1) * stride + 1, wj + (wo - 1) * stride + 1, c),
                (1, stride, stride, 1)))
    col = jnp.stack(patches, axis=3)                 # (N, Ho, Wo, KK, C)
    return col.reshape(n * ho * wo, kh * kw * c), (n, ho, wo)


def conv_bn_act(x, p, *, stride=1, padding=0, act="none", alpha=0.01,
                residual=None):
    """Conv (im2col + bf16 MXU matmul) + folded-BN shift (+ fused residual) + act."""
    w = p["w"]                                       # HWIO, BN scale folded in
    kh, kw, cin, cout = w.shape
    xb = x.astype(jnp.bfloat16)
    if kh == 1 and kw == 1 and stride == 1 and padding == 0:
        n, h, ww, _ = x.shape
        cols, (ho, wo) = xb.reshape(n * h * ww, cin), (h, ww)
    else:
        cols, (n, ho, wo) = _im2col(xb, kh, kw, stride, padding)
    m, k = cols.shape
    tm = _pick_tm(m, k)
    mp = _round_up(m, tm)
    nk, tk = _split_k(k)
    kp = nk * tk
    if mp != m or kp != k:
        cols = jnp.pad(cols, ((0, mp - m), (0, kp - k)))

    wmat = w.reshape(kh * kw * cin, cout).astype(jnp.bfloat16)
    if kp != k:
        wmat = jnp.pad(wmat, ((0, kp - k), (0, 0)))
    tn = 128 if (cout > 128 and cout % 128 == 0) else cout
    shift = p["shift"].reshape(1, cout)

    args = [cols, wmat, shift]
    has_res = residual is not None
    if has_res:
        r = residual.reshape(-1, cout)
        if mp != m:
            r = jnp.pad(r, ((0, mp - m), (0, 0)))
        args.append(r)

    out = _conv_mm_call(mp, kp, cout, tm, tn, nk, act, float(alpha),
                        has_res)(*args)
    return out[:m].reshape(n, ho, wo, cout)


def bmm(a, b):
    bsz, m, k = a.shape
    n = b.shape[2]
    return _bmm_call(bsz, m, k, n)(a, b)


def maxpool_3x3_s2(x):
    n, h, w, c = x.shape
    ho = (h + 2 - 3) // 2 + 1
    wo = (w + 2 - 3) // 2 + 1
    xp = jnp.pad(x, ((0, 0), (1, 1), (1, 1), (0, 0)),
                 constant_values=-jnp.inf)
    wins = []
    for i in range(3):
        for j in range(3):
            wins.append(jax.lax.slice(
                xp, (0, i, j, 0),
                (n, i + (ho - 1) * 2 + 1, j + (wo - 1) * 2 + 1, c),
                (1, 2, 2, 1)))
    length = n * ho * wo * c
    stacked = jnp.stack(wins, 0).reshape(9, length)
    tr = 512
    rows = -(-length // 128)
    rows_p = _round_up(max(rows, 8), tr) if rows > tr else _round_up(rows, 8)
    tr = min(tr, rows_p)
    lp = rows_p * 128
    if lp != length:
        stacked = jnp.pad(stacked, ((0, 0), (0, lp - length)))
    out = _max9_call(rows_p, tr)(stacked.reshape(9, rows_p, 128))
    return out.reshape(-1)[:length].reshape(n, ho, wo, c)


def global_avg_pool(x):
    n, h, w, c = x.shape
    return _gap_call(n, h * w, c)(x.reshape(n, h * w, c))


def grouped_conv1x1(x, wg):
    """1x1 conv with groups == out_channels (conv_last), done on the VPU."""
    n, h, w, c = x.shape
    g, gs = wg.shape
    m = n * h * w
    mp = _round_up(m, 8)
    xg = x.reshape(m, g, gs)
    if mp != m:
        xg = jnp.pad(xg, ((0, mp - m), (0, 0), (0, 0)))
    out = _group_conv_call(mp, g, gs)(xg, wg)
    return out[:m].reshape(n, h, w, g)


def subspace_project(x, vectors):
    n, h, w, c = x.shape
    k = vectors.shape[-1]
    hw = h * w
    v_t = jnp.transpose(vectors.reshape(n, hw, k), (0, 2, 1))     # (N, k, hw)
    v_t = _l1_norm_call(n, k, hw)(v_t)
    v = jnp.transpose(v_t, (0, 2, 1))                             # (N, hw, k)
    mat = bmm(v_t, v)                                             # (N, k, k)
    # TODO(synk): torch.inverse on the tiny (k,k) Gram matrix has no clean
    # Pallas equivalent; it stays in jnp.linalg.inv (f32 for conditioning).
    mat_inv = jnp.linalg.inv(mat)
    project_mat = bmm(mat_inv, v_t)                               # (N, k, hw)
    input_t = x.reshape(n, hw, c)                                 # == permute(0,2,1)
    project_feature = bmm(project_mat, input_t)                   # (N, k, c)
    out = bmm(v, project_feature)                                 # (N, hw, c)
    return out.reshape(n, h, w, c)


def dlt_solve(src_p, off_set):
    # TODO(synk): DLT_solve is referenced but not defined in the source module;
    # canonical 4-point DLT (8x8 linear solve) implemented in plain JAX.
    bs = src_p.shape[0]
    src = src_p.reshape(bs, 4, 2).astype(jnp.float32)
    dst = src + off_set.reshape(bs, 4, 2)
    ones = jnp.ones((bs, 4, 1), jnp.float32)
    xy1 = jnp.concatenate([src, ones], axis=2)
    zeros = jnp.zeros_like(xy1)
    m1 = jnp.concatenate([jnp.concatenate([xy1, zeros], axis=2),
                          jnp.concatenate([zeros, xy1], axis=2)],
                         axis=2).reshape(bs, 8, 6)
    m2 = jnp.matmul(dst.reshape(-1, 2, 1),
                    src.reshape(-1, 1, 2)).reshape(bs, 8, 2)
    a_mat = jnp.concatenate([m1, -m2], axis=2)
    b_vec = dst.reshape(bs, 8, 1)
    h8 = jnp.linalg.solve(a_mat, b_vec).reshape(bs, 8)
    h = jnp.concatenate([h8, jnp.ones((bs, 1), jnp.float32)], axis=1)
    return h.reshape(bs, 1, 3, 3)


# ----------------------------------------------------------------------------
# Parameter initialisation (deterministic, synthetic; eval-mode BN folded)
# ----------------------------------------------------------------------------
def _bn_fold(key, c, eps=1e-5):
    k1, k2, k3, k4 = jax.random.split(key, 4)
    gamma = 1.0 + 0.1 * jax.random.normal(k1, (c,), jnp.float32)
    beta = 0.1 * jax.random.normal(k2, (c,), jnp.float32)
    mean = 0.1 * jax.random.normal(k3, (c,), jnp.float32)
    var = 1.0 + 0.1 * jnp.abs(jax.random.normal(k4, (c,), jnp.float32))
    scale = gamma / jnp.sqrt(var + eps)
    shift = beta - mean * scale
    return scale, shift


def _conv_bn(key, k, cin, cout, *, bias=False):
    kw_, kb, kbn = jax.random.split(key, 3)
    w = jax.random.normal(kw_, (k, k, cin, cout), jnp.float32) * \
        math.sqrt(2.0 / (k * k * cin))
    scale, shift = _bn_fold(kbn, cout)
    if bias:
        b = 0.01 * jax.random.normal(kb, (cout,), jnp.float32)
        shift = shift + scale * b
    # Fold the BN scale into the conv weights -> kernel only applies shift+act.
    return {"w": w * scale, "shift": shift}


def init_params(key):
    keys = iter(jax.random.split(key, 128))
    nk_ = lambda: next(keys)
    p = {}
    p["sf"] = [_conv_bn(nk_(), 3, 1, 4),
               _conv_bn(nk_(), 3, 4, 8),
               _conv_bn(nk_(), 3, 8, 1)]
    p["conv1"] = _conv_bn(nk_(), 7, 2, 64)

    def make_layer(cin, cout, blocks, stride):
        layer = []
        for bi in range(blocks):
            s = stride if bi == 0 else 1
            ci = cin if bi == 0 else cout
            blk = {"conv1": _conv_bn(nk_(), 3, ci, cout),
                   "conv2": _conv_bn(nk_(), 3, cout, cout),
                   "stride": s}
            if s != 1 or ci != cout:
                blk["down"] = _conv_bn(nk_(), 1, ci, cout)
            layer.append(blk)
        return layer

    p["layer1"] = make_layer(64, 64, 3, 1)
    p["layer2"] = make_layer(64, 128, 4, 2)
    p["layer3"] = make_layer(128, 256, 6, 2)
    p["layer4"] = make_layer(256, 512, 3, 2)

    def make_subspace(cin, k=16):
        return {"c0": _conv_bn(nk_(), 1, cin, k, bias=True),
                "c1": _conv_bn(nk_(), 1, k, k, bias=True),
                "c2": _conv_bn(nk_(), 1, k, k, bias=True)}

    p["sp3"] = make_subspace(256)
    p["sp4"] = make_subspace(512)

    # conv_last: Conv2d(512, 8, k=1, groups=8, bias=False) -> (8 groups, 64 in)
    p["conv_last"] = jax.random.normal(nk_(), (8, 64), jnp.float32) * \
        math.sqrt(2.0 / 64)
    return p


# ----------------------------------------------------------------------------
# Forward pass
# ----------------------------------------------------------------------------
def run_share_feature(x, sfp):
    x = conv_bn_act(x, sfp[0], stride=1, padding=1, act="relu")
    x = conv_bn_act(x, sfp[1], stride=1, padding=1, act="relu")
    x = conv_bn_act(x, sfp[2], stride=1, padding=1, act="relu")
    return x


def run_basic_block(x, blk):
    out = conv_bn_act(x, blk["conv1"], stride=blk["stride"], padding=1,
                      act="leaky", alpha=0.01)
    if "down" in blk:
        residual = conv_bn_act(x, blk["down"], stride=blk["stride"],
                               padding=0, act="none")
    else:
        residual = x
    # conv2 + BN + residual add + LeakyReLU fused into one matmul kernel.
    return conv_bn_act(out, blk["conv2"], stride=1, padding=1,
                       act="leaky", alpha=0.01, residual=residual)


def run_layer(x, layer):
    for blk in layer:
        x = run_basic_block(x, blk)
    return x


def run_subspace_block(x, p):
    residual = conv_bn_act(x, p["c0"], stride=1, padding=0,
                           act="leaky", alpha=0.01)
    out = conv_bn_act(residual, p["c1"], stride=1, padding=0,
                      act="leaky", alpha=0.01)
    # conv2 + BN + residual add (no activation) fused.
    return conv_bn_act(out, p["c2"], stride=1, padding=0, act="none",
                       residual=residual)


def run_subspace(x, p):
    sub = run_subspace_block(x, p)
    return subspace_project(x, sub)


def run_branch(x, p):
    x = conv_bn_act(x, p["conv1"], stride=2, padding=3, act="leaky", alpha=0.01)
    x = maxpool_3x3_s2(x)
    x = run_layer(x, p["layer1"])
    x = run_layer(x, p["layer2"])
    x = run_subspace(run_layer(x, p["layer3"]), p["sp3"])
    x = run_subspace(run_layer(x, p["layer4"]), p["sp4"])
    x = grouped_conv1x1(x, p["conv_last"])
    return global_avg_pool(x)                     # (N, 8)


def net_forward(image_patches, h4pt, p):
    # image_patches: (B, 2, H, W) NCHW, like the PyTorch module
    img1 = jnp.transpose(image_patches[:, 0:1], (0, 2, 3, 1))   # (B,H,W,1)
    img2 = jnp.transpose(image_patches[:, 1:2], (0, 2, 3, 1))
    f1 = run_share_feature(img1, p["sf"])
    f2 = run_share_feature(img2, p["sf"])
    x_f = jnp.concatenate([f1, f2], axis=-1)
    x_b = jnp.concatenate([f2, f1], axis=-1)
    off_f = run_branch(x_f, p)
    off_b = run_branch(x_b, p)
    homo_f = dlt_solve(h4pt, off_f)[:, 0]
    homo_b = dlt_solve(h4pt, off_b)[:, 0]
    return homo_b, homo_f


# ----------------------------------------------------------------------------
if __name__ == "__main__":
    key = jax.random.PRNGKey(0)
    k_img, k_par = jax.random.split(key)
    B, CROP = 2, 160                               # params.crop_size = 160
    image_patches = jax.random.normal(k_img, (B, 2, CROP, CROP), jnp.float32)
    corners = jnp.array([0.0, 0.0, CROP - 1.0, 0.0,
                         0.0, CROP - 1.0, CROP - 1.0, CROP - 1.0], jnp.float32)
    h4pt = jnp.tile(corners[None, :], (B, 1))      # (B, 8)

    params = init_params(k_par)
    homo_b, homo_f = net_forward(image_patches, h4pt, params)
    (homo_b, homo_f) = jax.block_until_ready((homo_b, homo_f))

    assert homo_b.shape == (B, 3, 3) and homo_f.shape == (B, 3, 3)
    assert bool(jnp.all(jnp.isfinite(homo_b))) and bool(jnp.all(jnp.isfinite(homo_f)))
    print("KERNEL_OK")
</pallas_src>

<mosaic_0001>
module attributes {stable_mosaic.version = 11 : i64} {
  func.func @kernel(%arg0: i32, %arg1: i32, %arg2: memref<2048x9xbf16, #tpu.memory_space<vmem>>, %arg3: memref<9x4xbf16, #tpu.memory_space<vmem>>, %arg4: memref<1x4xf32, #tpu.memory_space<vmem>>, %arg5: memref<2048x4xf32, #tpu.memory_space<vmem>>) attributes {dimension_semantics = [#tpu.dimension_semantics<parallel>, #tpu.dimension_semantics<parallel>], iteration_bounds = array<i64: 25, 1>, scalar_prefetch = 0 : i64, scratch_operands = 0 : i64, tpu.core_type = #tpu.core_type<tc>, window_params = [{transform_indices = @transform_0, window_bounds = array<i64: 2048, 9>}, {transform_indices = @transform_1, window_bounds = array<i64: 9, 4>}, {transform_indices = @transform_2, window_bounds = array<i64: 1, 4>}, {transform_indices = @transform_3, window_bounds = array<i64: 2048, 4>}]} {
    %c0 = arith.constant 0 : index
    %c0_0 = arith.constant 0 : index
    %0 = vector.load %arg2[%c0, %c0_0] : memref<2048x9xbf16, #tpu.memory_space<vmem>>, vector<2048x9xbf16>
    %c0_1 = arith.constant 0 : index
    %c0_2 = arith.constant 0 : index
    %1 = vector.load %arg3[%c0_1, %c0_2] : memref<9x4xbf16, #tpu.memory_space<vmem>>, vector<9x4xbf16>
    %cst = arith.constant dense<0.000000e+00> : vector<2048x4xf32>
    %2 = tpu.matmul %0, %1, %cst {dimension_numbers = #tpu.dot_dimension_numbers<[1], [0], [0], [1], [0, 0, 1, 1], [], []>} : vector<2048x9xbf16>, vector<9x4xbf16>, vector<2048x4xf32> -> vector<2048x4xf32>
    %c0_3 = arith.constant 0 : index
    %c0_4 = arith.constant 0 : index
    %3 = vector.load %arg4[%c0_3, %c0_4] : memref<1x4xf32, #tpu.memory_space<vmem>>, vector<1x4xf32>
    %4 = vector.broadcast %3 : vector<1x4xf32> to vector<2048x4xf32>
    %5 = arith.addf %2, %4 : vector<2048x4xf32>
    %cst_5 = arith.constant 0.000000e+00 : f32
    %6 = vector.broadcast %cst_5 : f32 to vector<2048x4xf32>
    %7 = arith.maximumf %5, %6 : vector<2048x4xf32>
    %c0_6 = arith.constant 0 : index
    %c0_7 = arith.constant 0 : index
    %8 = vector.load %arg5[%c0_6, %c0_7] : memref<2048x4xf32, #tpu.memory_space<vmem>>, vector<2048x4xf32>
    tpu.vector_store %arg5[%c0_6, %c0_7], %7 {strides = array<i32>} : memref<2048x4xf32, #tpu.memory_space<vmem>>, vector<2048x4xf32>,
    return
  }
  func.func @transform_0(%arg0: i32, %arg1: i32) -> (i32, i32) {
    %c0_i32 = arith.constant 0 : i32
    %c0_i32_0 = arith.constant 0 : i32
    return %arg0, %c0_i32 : i32, i32
  }
  func.func @transform_1(%arg0: i32, %arg1: i32) -> (i32, i32) {
    %c0_i32 = arith.constant 0 : i32
    %c0_i32_0 = arith.constant 0 : i32
    return %c0_i32, %arg1 : i32, i32
  }
  func.func @transform_2(%arg0: i32, %arg1: i32) -> (i32, i32) {
    %c0_i32 = arith.constant 0 : i32
    %c0_i32_0 = arith.constant 0 : i32
    return %c0_i32, %arg1 : i32, i32
  }
  func.func @transform_3(%arg0: i32, %arg1: i32) -> (i32, i32) {
    %c0_i32 = arith.constant 0 : i32
    return %arg0, %arg1 : i32, i32
  }
}

</mosaic_0001>

<bundles_post_ra>
// kernel: tpu_custom_call.1
= control target key start
LH: loop header
LB: loop body
LE: loop exit
PB: predicated region body
PF: predicated region fallthrough
CT: control target
= control target key end

     0   :  { %8 = vsyncpa [#allocation3], 0  ;;  %s5347_s0 = inlined_call_operand.hbm [shape: bf16[51200,9], index: 0, kind: input, shape index: {}]   ;;  %s5348_s1 = inlined_call_operand.vmem [shape: bf16[9,4], index: 1, kind: input, shape index: {}]   ;;  %s5349_s2 = inlined_call_operand.vmem [shape: f32[1,4], index: 2, kind: input, shape index: {}]   ;;  %s5350_s3 = inlined_call_operand.vmem [shape: f32[51200,4], index: 3, kind: output, shape index: {}]  }
   0x1   :  { %10 = vsyncpa [#allocation3 + $0x1], 0  ;;  %s4188_s12 = smov 0   ;;  %s4190_s13 = smov 0  }
   0x2   :  { %s4192_s14 = smov 0   ;;  %s4194_s15 = smov 0  }
   0x3   :  { %s4196_s16 = smov 0   ;;  %s4198_s17 = smov 0  }
   0x4 LB: > { %s3230_s18 = sadd.s32 4294967295, %s4162_s17   ;;  %s28_s19 = sadd.s32 1, %s4158_s16  ;;  %s4162_s17 = sphi %s4198_s17, %s16_s17   ;;  %s4158_s16 = sphi %s4196_s16, %s5358_s16   ;;  %s4154_s15 = sphi %s4194_s15, %s5357_s15   ;;  %s4150_s14 = sphi %s4192_s14, %s5356_s14   ;;  %s4146_s13 = sphi %s4190_s13, %s5355_s13   ;;  %s4142_s12 = sphi %s4188_s12, %s5354_s12  }
   0x5   : > { %p30_p0 = scmp.ge.s32.totalorder %s28_s19, 25  ;;  %s35_s20 = sadd.s32 1, %s4150_s14 }
   0x6   : > { %p42_p1 = scmp.ne.s32.totalorder %s4150_s14, %s4146_s13  ;;  %p43_p2 = scmp.eq.s32.totalorder %s4162_s17, 0 }
   0x7   : > { %s5360_s19 = smov (%p30_p0, %s28_s19), 0  ;;  %p48_p4 = scmp.ne.s32.totalorder %s4146_s13, %s4142_s12 }
   0x8   : > { %p4224_p3 = por %p43_p2, %p42_p1  ;;  %s32_s22 = ssub.s32 %s4158_s16, %s5360_s19 }
   0x9   : > { %p49_p5 = scmp.eq.s32.totalorder %s3230_s18, 0  ;;  %p33_p6 = scmp.eq.s32.totalorder %s32_s22, 0 }
   0xa   : > { %p3899_p8 = scmp.lt.s32.totalorder %s4162_s17, 25  ;;  %s165_s25 = sand.u32 1, %s4150_s14  }
   0xb   : > { %p4231_p7 = por %p49_p5, %p48_p4  ;;  %s3503_s26 = sshll.u32 %s4158_s16, 14 }
   0xc   : > { %s4237_s24 = scalar_select %p33_p6, %s4150_s14, %s35_s20  }
   0xd   : > { %s3236_s27 = sshll.u32 %s165_s25, 10  ;;  %s4244_s30 = scalar_lea.hbm %s5347_s0, %s3503_s26 }
   0xe   : > { %s169_s4 = scalar_lea.vmem [#allocation2], %s3236_s27  ;;  %p4248_p9 = pnand %p3899_p8, %p4224_p3 }
   0xf   : > { %s176_s5 = sshll.u32 %s169_s4, 4  ;;  %s4254_s7 = scalar_lea.sflag [#allocation3], %s165_s25  ;;  %s4252_s5 = int_to_ptr.vmem [resolvable:$true] %s176_s5 }
  0x10   : > { %s4082_s8 = scalar_lea.hbm %s4244_s30, 16384  ;;  %p4084_p11 = pneg %p4248_p9 }
  0x11   : > { %p4083_p10 = scmp.ne.s32.totalorder %s4244_s30, %s4082_s8  ;;  %s4087_s11 = scalar_lea.hbm %s5347_s0, 409600 }
  0x12   : > { %p4088_p0 = scmp.lt.u32.totalorder %s4244_s30, %s5347_s0  ;;  %p4089_p1 = scmp.lt.u32.totalorder %s4087_s11, %s4082_s8 }
  0x13   : > { %p4085_p12 = pnand %p4084_p11, %p4083_p10  ;;  %p4091_p3 = scmp.lt.u32.totalorder %s4082_s8, %s4244_s30 }
  0x14   : > { %p4090_p2 = por %p4089_p1, %p4088_p0 }
  0x15   : > { %p4086_p13 = pneg %p4085_p12 }
  0x16   : > { %p4092_p4 = por %p4091_p3, %p4090_p2 }
  0x18   : > { %p4093_p5 = pnand %p4092_p4, %p4086_p13 }
  0x1a   : > { %4096 = shalt.err (!%p4093_p5)
}
  0x1b   : > { %s4097_s20 = scalar_lea.vmem %s4252_s5, 16384  ;;  %s4164_s21 = smov [#allocation2]  }
  0x1c   : > { %p4098_p6 = scmp.ne.s32.totalorder %s4252_s5, %s4097_s20  ;;  %s4102_s22 = sshll.u32 %s4164_s21, 4  ;;  %s4103_s22 = int_to_ptr.vmem [resolvable:$false] %s4102_s22 }
  0x1d   : > { %s4104_s25 = scalar_lea.vmem %s4103_s22, 32768  ;;  %p4105_p12 = scmp.lt.s32.totalorder %s4252_s5, %s4103_s22 }
  0x1e   : > { %p4100_p8 = pnand %p4098_p6, %p4084_p11  ;;  %p4106_p0 = scmp.lt.s32.totalorder %s4104_s25, %s4097_s20 }
  0x20   : > { %p4101_p10 = pneg %p4100_p8  ;;  %p4107_p1 = por %p4106_p0, %p4105_p12 }
  0x22   : > { %p4108_p2 = pnand %p4107_p1, %p4101_p10 }
  0x24   : > { %4111 = shalt.err (!%p4108_p2)
}
  0x25   : > { %s4165_s26 = smov 64   ;;  %s4166_s27 = smov 4  }
  0x26   : > { %3898 = dma.hbm_to_vmem [thread:$0]  (!%p4248_p9), %s4244_s30, 16384, %s4252_s5, %s4254_s7, %s4165_s26, %s4165_s26, %s4166_s27  }
  0x27   : > { %p3239_p11 = scmp.ge.s32.totalorder %s4162_s17, 1  ;;  %p184_p13 = scmp.lt.s32.totalorder %s4162_s17, 26 }
  0x29   : > { %p185_p3 = pnand %p3239_p11, %p184_p13 }
  0x2a   : > { %s190_s28 = sand.u32 (!%p185_p3), 1, %s4146_s13  }
  0x2b   : > { %188 = sbr.rel (%p185_p3) target bundleno = 528 (0x210), region = 32  ;;  %s3240_s29 = sshll.u32 (!%p185_p3), %s190_s28, 10 }
  0x2c   : > { %s191_s4 = scalar_lea.sflag (!%p185_p3), [#allocation3], %s190_s28  ;;  %s4285_s8 = scalar_lea.vmem (!%p185_p3), [#allocation2], %s3240_s29 }
  0x32   : > { %4137 = dma.done.wait (%p4231_p7), %s191_s4, 16384  }
  0x33   : > { %4139 = vsyncadd (%p4231_p7), %s191_s4, 4294950912  ;;  %vm1540_vm0 = vcmask 1043456   ;;  %vm1541_vm1 = vcmask 1044480   ;;  %v4167_v0 = vmov 65535   ;;  %vm1155_vm2 = vcmask 72704   ;;  %v3952_v4 = vld [vmem:[%s4285_s8] sm:$0xff]  }
  0x34   : > { %v1542_v1 = vsel %vm1540_vm0, 4294967295, %v4167_v0  ;;  %v3951_v3 = vld [vmem:[%s5348_s1] sm:$0x1f]   ;;  %3635 = vmatprep.mubr.msk.bf16.mxu0 %vm1155_vm2, %v3952_v4  ;;  %v3954_v7 = vld [vmem:[%s4285_s8 + $0x8] sm:$0xff]   ;;  %v3956_v9 = vld [vmem:[%s4285_s8 + $0x10] sm:$0xff]   ;;  %s3241_s23 = sshll.u32 %s4154_s15, 8 }
  0x35   : > { %v1543_v2 = vsel %vm1541_vm1, %v1542_v1, 0  ;;  %v3953_v6 = vld [vmem:[%s4285_s8 + $0x200] sm:$0xff]   ;;  %v3955_v8 = vld [vmem:[%s4285_s8 + $0x208] sm:$0xff]   ;;  %v3957_v10 = vld [vmem:[%s4285_s8 + $0x210] sm:$0xff]   ;;  %p236_p7 = scmp.lt.s32.totalorder %s3241_s23, 6399  ;;  %vm2860_vm3 = vcmask 31744  }
  0x36   : > { %v1545_v5 = vand.u32 %v3951_v3, %v1543_v2  ;;  %3763 = vmatprep.mubr.msk.bf16.mxu1 %vm1155_vm2, %v3953_v6  ;;  %v3958_v11 = vld [vmem:[%s4285_s8 + $0x18] sm:$0xff]   ;;  %v3960_v13 = vld [vmem:[%s4285_s8 + $0x20] sm:$0xff]   ;;  %v3962_v15 = vld [vmem:[%s4285_s8 + $0x28] sm:$0xff]  }
  0x37   : > { %v3959_v12 = vld [vmem:[%s4285_s8 + $0x218] sm:$0xff]   ;;  %v3961_v14 = vld [vmem:[%s4285_s8 + $0x220] sm:$0xff]   ;;  %v3963_v16 = vld [vmem:[%s4285_s8 + $0x228] sm:$0xff]   ;;  %s5362_s23 = smov (!%p236_p7, %s3241_s23), 6399 }
  0x38   : > { %3633 = vmatprep.subr.bf16.mxu0 %v1545_v5  ;;  %3891 = vmatprep.subr.bf16.mxu1 %v1545_v5  ;;  %v3964_v17 = vld [vmem:[%s4285_s8 + $0x30] sm:$0xff]   ;;  %v3966_v19 = vld [vmem:[%s4285_s8 + $0x38] sm:$0xff]   ;;  %v3968_v21 = vld [vmem:[%s4285_s8 + $0x40] sm:$0xff]   ;;  %s3242_s7 = sshll.u32 %s5362_s23, 3 }
  0x39   : > { %3634 = vmatpush3.bf16.msra.mxu0 %v1545_v5  ;;  %3892 = vmatpush3.bf16.msra.mxu1 %v1545_v5  ;;  %v3965_v18 = vld [vmem:[%s4285_s8 + $0x230] sm:$0xff]   ;;  %v3967_v20 = vld [vmem:[%s4285_s8 + $0x238] sm:$0xff]   ;;  %v3969_v22 = vld [vmem:[%s4285_s8 + $0x240] sm:$0xff]   ;;  %s4527_s11 = scalar_lea.vmem %s5350_s3, %s3242_s7 }
  0x3a   : > { %v3970_v23 = vld [vmem:[%s4285_s8 + $0x48] sm:$0xff]   ;;  %v3972_v25 = vld [vmem:[%s4285_s8 + $0x50] sm:$0xff]   ;;  %v3974_v27 = vld [vmem:[%s4285_s8 + $0x58] sm:$0xff]  }
  0x3b   : > { %v3971_v24 = vld [vmem:[%s4285_s8 + $0x248] sm:$0xff]   ;;  %v3973_v26 = vld [vmem:[%s4285_s8 + $0x250] sm:$0xff]   ;;  %v3975_v28 = vld [vmem:[%s4285_s8 + $0x258] sm:$0xff]  }
  0x3c   : > { %3636 = vmatmul.mubr.msk.bf16.vlgmr.msra.gmra.mrb[0].mxu0 %vm1155_vm2, %v3954_v7  ;;  %3764 = vmatmul.mubr.msk.bf16.vlgmr.msra.gmra.mrb[0].mxu1 %vm1155_vm2, %v3955_v8  ;;  %v3976_v29 = vld [vmem:[%s4285_s8 + $0x60] sm:$0xff]   ;;  %v3978_v31 = vld [vmem:[%s4285_s8 + $0x68] sm:$0xff]   ;;  %v3980_v33 = vld [vmem:[%s4285_s8 + $0x70] sm:$0xff]  }
  0x3d   : > { %3639 = vmatprep.mubr.msk.bf16.mxu0 %vm1155_vm2, %v3956_v9  ;;  %3767 = vmatprep.mubr.msk.bf16.mxu1 %vm1155_vm2, %v3957_v10  ;;  %v3977_v30 = vld [vmem:[%s4285_s8 + $0x260] sm:$0xff]   ;;  %v3979_v32 = vld [vmem:[%s4285_s8 + $0x268] sm:$0xff]   ;;  %v3981_v34 = vld [vmem:[%s4285_s8 + $0x270] sm:$0xff]  }
  0x3e   : > { %v3982_v35 = vld [vmem:[%s4285_s8 + $0x78] sm:$0xff]   ;;  %v3984_v37 = vld [vmem:[%s4285_s8 + $0x80] sm:$0xff]   ;;  %v3986_v39 = vld [vmem:[%s4285_s8 + $0x88] sm:$0xff]  }
  0x3f   : > { %v3983_v36 = vld [vmem:[%s4285_s8 + $0x278] sm:$0xff]   ;;  %v3985_v38 = vld [vmem:[%s4285_s8 + $0x280] sm:$0xff]   ;;  %v3987_v40 = vld [vmem:[%s4285_s8 + $0x288] sm:$0xff]  }
  0x40   : > { %v3988_v41 = vld [vmem:[%s4285_s8 + $0x90] sm:$0xff]   ;;  %v3990_v43 = vld [vmem:[%s4285_s8 + $0x98] sm:$0xff]   ;;  %v3992_v45 = vld [vmem:[%s4285_s8 + $0xa0] sm:$0xff]  }
  0x41   : > { %v3989_v42 = vld [vmem:[%s4285_s8 + $0x290] sm:$0xff]   ;;  %v3991_v44 = vld [vmem:[%s4285_s8 + $0x298] sm:$0xff]   ;;  %v3993_v46 = vld [vmem:[%s4285_s8 + $0x2a0] sm:$0xff]  }
  0x42   : > { %v3994_v47 = vld [vmem:[%s4285_s8 + $0xa8] sm:$0xff]   ;;  %v3996_v49 = vld [vmem:[%s4285_s8 + $0xb0] sm:$0xff]   ;;  %v3998_v51 = vld [vmem:[%s4285_s8 + $0xb8] sm:$0xff]  }
  0x43   : > { %v3995_v48 = vld [vmem:[%s4285_s8 + $0x2a8] sm:$0xff]   ;;  %v3997_v50 = vld [vmem:[%s4285_s8 + $0x2b0] sm:$0xff]   ;;  %v3999_v52 = vld [vmem:[%s4285_s8 + $0x2b8] sm:$0xff]  }
  0x44   : > { %3640 = vmatmul.mubr.msk.bf16.gmra.mrb[4].mxu0 %vm1155_vm2, %v3958_v11  ;;  %3768 = vmatmul.mubr.msk.bf16.gmra.mrb[4].mxu1 %vm1155_vm2, %v3959_v12  ;;  %v4000_v53 = vld [vmem:[%s4285_s8 + $0xc0] sm:$0xff]   ;;  %v4002_v55 = vld [vmem:[%s4285_s8 + $0xc8] sm:$0xff]   ;;  %v4004_v57 = vld [vmem:[%s4285_s8 + $0xd0] sm:$0xff]  }
  0x45   : > { %3643 = vmatprep.mubr.msk.bf16.mxu0 %vm1155_vm2, %v3960_v13  ;;  %3771 = vmatprep.mubr.msk.bf16.mxu1 %vm1155_vm2, %v3961_v14  ;;  %v4001_v54 = vld [vmem:[%s4285_s8 + $0x2c0] sm:$0xff]   ;;  %v4003_v56 = vld [vmem:[%s4285_s8 + $0x2c8] sm:$0xff]   ;;  %v4005_v58 = vld [vmem:[%s4285_s8 + $0x2d0] sm:$0xff]  }
  0x46   : > { %v4006_v59 = vld [vmem:[%s4285_s8 + $0xd8] sm:$0xff]   ;;  %v4008_v61 = vld [vmem:[%s4285_s8 + $0xe0] sm:$0xff]   ;;  %v4010_v63 = vld [vmem:[%s4285_s8 + $0xe8] sm:$0xff]  }
  0x47   : > { %v4007_v60 = vld [vmem:[%s4285_s8 + $0x2d8] sm:$0xff]   ;;  %v4009_v62 = vld [vmem:[%s4285_s8 + $0x2e0] sm:$0xff]   ;;  %v4011_v0 = vld [vmem:[%s4285_s8 + $0x2e8] sm:$0xff]  }
  0x48   : > { %v4012_v1 = vld [vmem:[%s4285_s8 + $0xf0] sm:$0xff]   ;;  %v4014_v3 = vld [vmem:[%s4285_s8 + $0xf8] sm:$0xff]   ;;  %v4016_v5 = vld [vmem:[%s4285_s8 + $0x100] sm:$0xff]  }
  0x49   : > { %v4013_v2 = vld [vmem:[%s4285_s8 + $0x2f0] sm:$0xff]   ;;  %v4015_v4 = vld [vmem:[%s4285_s8 + $0x2f8] sm:$0xff]   ;;  %v4017_v6 = vld [vmem:[%s4285_s8 + $0x300] sm:$0xff]  }
  0x4a   : > { %v4018_v7 = vld [vmem:[%s4285_s8 + $0x108] sm:$0xff]   ;;  %v4020_v9 = vld [vmem:[%s4285_s8 + $0x110] sm:$0xff]   ;;  %v4022_v11 = vld [vmem:[%s4285_s8 + $0x118] sm:$0xff]  }
  0x4b   : > { %v4019_v8 = vld [vmem:[%s4285_s8 + $0x308] sm:$0xff]   ;;  %v4021_v10 = vld [vmem:[%s4285_s8 + $0x310] sm:$0xff]   ;;  %v4023_v12 = vld [vmem:[%s4285_s8 + $0x318] sm:$0xff]  }
  0x4c   : > { %3644 = vmatmul.mubr.msk.bf16.gmra.mrb[8].mxu0 %vm1155_vm2, %v3962_v15  ;;  %3772 = vmatmul.mubr.msk.bf16.gmra.mrb[8].mxu1 %vm1155_vm2, %v3963_v16  ;;  %v4024_v13 = vld [vmem:[%s4285_s8 + $0x120] sm:$0xff]   ;;  %v4026_v15 = vld [vmem:[%s4285_s8 + $0x128] sm:$0xff]  }
  0x4d   : > { %3647 = vmatprep.mubr.msk.bf16.mxu0 %vm1155_vm2, %v3964_v17  ;;  %3775 = vmatprep.mubr.msk.bf16.mxu1 %vm1155_vm2, %v3965_v18  ;;  %v4025_v14 = vld [vmem:[%s4285_s8 + $0x320] sm:$0xff]   ;;  %v4027_v16 = vld [vmem:[%s4285_s8 + $0x328] sm:$0xff]   ;;  %v4028_v17 = vld [vmem:[%s4285_s8 + $0x130] sm:$0xff]  }
  0x4e   : > { %v4029_v18 = vld [vmem:[%s4285_s8 + $0x330] sm:$0xff]  }
  0x54   : > { %3648 = vmatmul.mubr.msk.bf16.gmra.mrb[12].mxu0 %vm1155_vm2, %v3966_v19  ;;  %3776 = vmatmul.mubr.msk.bf16.gmra.mrb[12].mxu1 %vm1155_vm2, %v3967_v20  ;;  %v4030_v19 = vld [vmem:[%s4285_s8 + $0x138] sm:$0xff]  }
  0x55   : > { %3651 = vmatprep.mubr.msk.bf16.mxu0 %vm1155_vm2, %v3968_v21  ;;  %3779 = vmatprep.mubr.msk.bf16.mxu1 %vm1155_vm2, %v3969_v22  ;;  %v4031_v20 = vld [vmem:[%s4285_s8 + $0x338] sm:$0xff]   ;;  %v4032_v21 = vld [vmem:[%s4285_s8 + $0x140] sm:$0xff]  }
  0x56   : > { %v4033_v22 = vld [vmem:[%s4285_s8 + $0x340] sm:$0xff]  }
  0x5c   : > { %3652 = vmatmul.mubr.msk.bf16.gmra.mrb[16].mxu0 %vm1155_vm2, %v3970_v23  ;;  %3780 = vmatmul.mubr.msk.bf16.gmra.mrb[16].mxu1 %vm1155_vm2, %v3971_v24  ;;  %v4034_v23 = vld [vmem:[%s4285_s8 + $0x148] sm:$0xff]  }
  0x5d   : > { %3655 = vmatprep.mubr.msk.bf16.mxu0 %vm1155_vm2, %v3972_v25  ;;  %3783 = vmatprep.mubr.msk.bf16.mxu1 %vm1155_vm2, %v3973_v26  ;;  %v4035_v24 = vld [vmem:[%s4285_s8 + $0x348] sm:$0xff]   ;;  %v4036_v25 = vld [vmem:[%s4285_s8 + $0x150] sm:$0xff]  }
  0x5e   : > { %v4037_v26 = vld [vmem:[%s4285_s8 + $0x350] sm:$0xff]  }
  0x64   : > { %3656 = vmatmul.mubr.msk.bf16.gmra.mrb[20].mxu0 %vm1155_vm2, %v3974_v27  ;;  %3784 = vmatmul.mubr.msk.bf16.gmra.mrb[20].mxu1 %vm1155_vm2, %v3975_v28  ;;  %v4038_v27 = vld [vmem:[%s4285_s8 + $0x158] sm:$0xff]  }
  0x65   : > { %3659 = vmatprep.mubr.msk.bf16.mxu0 %vm1155_vm2, %v3976_v29  ;;  %3787 = vmatprep.mubr.msk.bf16.mxu1 %vm1155_vm2, %v3977_v30  ;;  %v4039_v28 = vld [vmem:[%s4285_s8 + $0x358] sm:$0xff]   ;;  %v4040_v29 = vld [vmem:[%s4285_s8 + $0x160] sm:$0xff]  }
  0x66   : > { %v4041_v30 = vld [vmem:[%s4285_s8 + $0x360] sm:$0xff]  }
  0x6c   : > { %3660 = vmatmul.mubr.msk.bf16.gmra.mrb[24].mxu0 %vm1155_vm2, %v3978_v31  ;;  %3788 = vmatmul.mubr.msk.bf16.gmra.mrb[24].mxu1 %vm1155_vm2, %v3979_v32  ;;  %v4042_v31 = vld [vmem:[%s4285_s8 + $0x168] sm:$0xff]  }
  0x6d   : > { %3663 = vmatprep.mubr.msk.bf16.mxu0 %vm1155_vm2, %v3980_v33  ;;  %3791 = vmatprep.mubr.msk.bf16.mxu1 %vm1155_vm2, %v3981_v34  ;;  %v4043_v32 = vld [vmem:[%s4285_s8 + $0x368] sm:$0xff]   ;;  %v4044_v33 = vld [vmem:[%s4285_s8 + $0x170] sm:$0xff]  }
  0x6e   : > { %v4045_v34 = vld [vmem:[%s4285_s8 + $0x370] sm:$0xff]  }
  0x74   : > { %3664 = vmatmul.mubr.msk.bf16.gmra.mrb[28].mxu0 %vm1155_vm2, %v3982_v35  ;;  %3792 = vmatmul.mubr.msk.bf16.gmra.mrb[28].mxu1 %vm1155_vm2, %v3983_v36  ;;  %v4046_v35 = vld [vmem:[%s4285_s8 + $0x178] sm:$0xff]  }
  0x75   : > { %3667 = vmatprep.mubr.msk.bf16.mxu0 %vm1155_vm2, %v3984_v37  ;;  %3795 = vmatprep.mubr.msk.bf16.mxu1 %vm1155_vm2, %v3985_v38  ;;  %v4047_v36 = vld [vmem:[%s4285_s8 + $0x378] sm:$0xff]   ;;  %v4048_v37 = vld [vmem:[%s4285_s8 + $0x180] sm:$0xff]  }
  0x76   : > { %v4049_v38 = vld [vmem:[%s4285_s8 + $0x380] sm:$0xff]  }
  0x7c   : > { %3668 = vmatmul.mubr.msk.bf16.gmra.mrb[32].mxu0 %vm1155_vm2, %v3986_v39  ;;  %3796 = vmatmul.mubr.msk.bf16.gmra.mrb[32].mxu1 %vm1155_vm2, %v3987_v40  ;;  %v4050_v39 = vld [vmem:[%s4285_s8 + $0x188] sm:$0xff]  }
  0x7d   : > { %3671 = vmatprep.mubr.msk.bf16.mxu0 %vm1155_vm2, %v3988_v41  ;;  %3799 = vmatprep.mubr.msk.bf16.mxu1 %vm1155_vm2, %v3989_v42  ;;  %v4051_v40 = vld [vmem:[%s4285_s8 + $0x388] sm:$0xff]   ;;  %v4052_v41 = vld [vmem:[%s4285_s8 + $0x190] sm:$0xff]  }
  0x7e   : > { %v4053_v42 = vld [vmem:[%s4285_s8 + $0x390] sm:$0xff]  }
  0x84   : > { %3672 = vmatmul.mubr.msk.bf16.gmra.mrb[36].mxu0 %vm1155_vm2, %v3990_v43  ;;  %3800 = vmatmul.mubr.msk.bf16.gmra.mrb[36].mxu1 %vm1155_vm2, %v3991_v44  ;;  %v4054_v43 = vld [vmem:[%s4285_s8 + $0x198] sm:$0xff]  }
  0x85   : > { %3675 = vmatprep.mubr.msk.bf16.mxu0 %vm1155_vm2, %v3992_v45  ;;  %3803 = vmatprep.mubr.msk.bf16.mxu1 %vm1155_vm2, %v3993_v46  ;;  %v4055_v44 = vld [vmem:[%s4285_s8 + $0x398] sm:$0xff]   ;;  %v4056_v45 = vld [vmem:[%s4285_s8 + $0x1a0] sm:$0xff]  }
  0x86   : > { %v4057_v46 = vld [vmem:[%s4285_s8 + $0x3a0] sm:$0xff]  }
  0x8c   : > { %3676 = vmatmul.mubr.msk.bf16.gmra.mrb[40].mxu0 %vm1155_vm2, %v3994_v47  ;;  %3804 = vmatmul.mubr.msk.bf16.gmra.mrb[40].mxu1 %vm1155_vm2, %v3995_v48  ;;  %v4058_v47 = vld [vmem:[%s4285_s8 + $0x1a8] sm:$0xff]  }
  0x8d   : > { %3679 = vmatprep.mubr.msk.bf16.mxu0 %vm1155_vm2, %v3996_v49  ;;  %3807 = vmatprep.mubr.msk.bf16.mxu1 %vm1155_vm2, %v3997_v50  ;;  %v4059_v48 = vld [vmem:[%s4285_s8 + $0x3a8] sm:$0xff]   ;;  %v4060_v49 = vld [vmem:[%s4285_s8 + $0x1b0] sm:$0xff]  }
  0x8e   : > { %v4061_v50 = vld [vmem:[%s4285_s8 + $0x3b0] sm:$0xff]  }
  0x94   : > { %3680 = vmatmul.mubr.msk.bf16.gmra.mrb[44].mxu0 %vm1155_vm2, %v3998_v51  ;;  %3808 = vmatmul.mubr.msk.bf16.gmra.mrb[44].mxu1 %vm1155_vm2, %v3999_v52  ;;  %v4516_v51 = vld [vmem:[%s5349_s2] ss:$0 sm:$0xff] }
  0x95   : > { %3683 = vmatprep.mubr.msk.bf16.mxu0 %vm1155_vm2, %v4000_v53  ;;  %3811 = vmatprep.mubr.msk.bf16.mxu1 %vm1155_vm2, %v4001_v54 }
  0x9c   : > { %3684 = vmatmul.mubr.msk.bf16.gmra.mrb[48].mxu0 %vm1155_vm2, %v4002_v55  ;;  %3812 = vmatmul.mubr.msk.bf16.gmra.mrb[48].mxu1 %vm1155_vm2, %v4003_v56 }
  0x9d   : > { %3687 = vmatprep.mubr.msk.bf16.mxu0 %vm1155_vm2, %v4004_v57  ;;  %3815 = vmatprep.mubr.msk.bf16.mxu1 %vm1155_vm2, %v4005_v58  ;;  %v4062_v58 = vld [vmem:[%s4285_s8 + $0x1b8] sm:$0xff]  }
  0xa4   : > { %3688 = vmatmul.mubr.msk.bf16.gmra.mrb[52].mxu0 %vm1155_vm2, %v4006_v59  ;;  %3816 = vmatmul.mubr.msk.bf16.gmra.mrb[52].mxu1 %vm1155_vm2, %v4007_v60  ;;  %v4063_v59 = vld [vmem:[%s4285_s8 + $0x3b8] sm:$0xff]  }
  0xa5   : > { %3691 = vmatprep.mubr.msk.bf16.mxu0 %vm1155_vm2, %v4008_v61  ;;  %3819 = vmatprep.mubr.msk.bf16.mxu1 %vm1155_vm2, %v4009_v62 }
  0xac   : > { %3692 = vmatmul.mubr.msk.bf16.gmra.mrb[56].mxu0 %vm1155_vm2, %v4010_v63  ;;  %3820 = vmatmul.mubr.msk.bf16.gmra.mrb[56].mxu1 %vm1155_vm2, %v4011_v0  ;;  %v4064_v0 = vld [vmem:[%s4285_s8 + $0x1c0] sm:$0xff]  }
  0xad   : > { %3695 = vmatprep.mubr.msk.bf16.mxu0 %vm1155_vm2, %v4012_v1  ;;  %3823 = vmatprep.mubr.msk.bf16.mxu1 %vm1155_vm2, %v4013_v2  ;;  %v4065_v1 = vld [vmem:[%s4285_s8 + $0x3c0] sm:$0xff]  }
  0xb4   : > { %3696 = vmatmul.mubr.msk.bf16.gmra.mrb[60].mxu0 %vm1155_vm2, %v4014_v3  ;;  %3824 = vmatmul.mubr.msk.bf16.gmra.mrb[60].mxu1 %vm1155_vm2, %v4015_v4 }
  0xb5   : > { %3699 = vmatprep.mubr.msk.bf16.mxu0 %vm1155_vm2, %v4016_v5  ;;  %3827 = vmatprep.mubr.msk.bf16.mxu1 %vm1155_vm2, %v4017_v6 }
  0xbc   : > { %3700 = vmatmul.mubr.msk.bf16.gmra.mrb[64].mxu0 %vm1155_vm2, %v4018_v7  ;;  %3828 = vmatmul.mubr.msk.bf16.gmra.mrb[64].mxu1 %vm1155_vm2, %v4019_v8 }
  0xbd   : > { %3703 = vmatprep.mubr.msk.bf16.mxu0 %vm1155_vm2, %v4020_v9  ;;  %3831 = vmatprep.mubr.msk.bf16.mxu1 %vm1155_vm2, %v4021_v10 }
  0xc4   : > { %3704 = vmatmul.mubr.msk.bf16.gmra.mrb[68].mxu0 %vm1155_vm2, %v4022_v11  ;;  %3832 = vmatmul.mubr.msk.bf16.gmra.mrb[68].mxu1 %vm1155_vm2, %v4023_v12 }
  0xc5   : > { %3707 = vmatprep.mubr.msk.bf16.mxu0 %vm1155_vm2, %v4024_v13  ;;  %3835 = vmatprep.mubr.msk.bf16.mxu1 %vm1155_vm2, %v4025_v14 }
  0xcc   : > { %3708 = vmatmul.mubr.msk.bf16.gmra.mrb[72].mxu0 %vm1155_vm2, %v4026_v15  ;;  %3836 = vmatmul.mubr.msk.bf16.gmra.mrb[72].mxu1 %vm1155_vm2, %v4027_v16 }
  0xcd   : > { %3711 = vmatprep.mubr.msk.bf16.mxu0 %vm1155_vm2, %v4028_v17  ;;  %3839 = vmatprep.mubr.msk.bf16.mxu1 %vm1155_vm2, %v4029_v18 }
  0xd4   : > { %3712 = vmatmul.mubr.msk.bf16.gmra.mrb[76].mxu0 %vm1155_vm2, %v4030_v19  ;;  %3840 = vmatmul.mubr.msk.bf16.gmra.mrb[76].mxu1 %vm1155_vm2, %v4031_v20 }
  0xd5   : > { %3715 = vmatprep.mubr.msk.bf16.mxu0 %vm1155_vm2, %v4032_v21  ;;  %3843 = vmatprep.mubr.msk.bf16.mxu1 %vm1155_vm2, %v4033_v22  ;;  %v4066_v22 = vld [vmem:[%s4285_s8 + $0x1c8] sm:$0xff]  }
  0xdc   : > { %3716 = vmatmul.mubr.msk.bf16.gmra.mrb[80].mxu0 %vm1155_vm2, %v4034_v23  ;;  %3844 = vmatmul.mubr.msk.bf16.gmra.mrb[80].mxu1 %vm1155_vm2, %v4035_v24  ;;  %v4067_v23 = vld [vmem:[%s4285_s8 + $0x3c8] sm:$0xff]  }
  0xdd   : > { %3719 = vmatprep.mubr.msk.bf16.mxu0 %vm1155_vm2, %v4036_v25  ;;  %3847 = vmatprep.mubr.msk.bf16.mxu1 %vm1155_vm2, %v4037_v26 }
  0xe4   : > { %3720 = vmatmul.mubr.msk.bf16.gmra.mrb[84].mxu0 %vm1155_vm2, %v4038_v27  ;;  %3848 = vmatmul.mubr.msk.bf16.gmra.mrb[84].mxu1 %vm1155_vm2, %v4039_v28  ;;  %v4068_v28 = vld [vmem:[%s4285_s8 + $0x1d0] sm:$0xff]  }
  0xe5   : > { %3723 = vmatprep.mubr.msk.bf16.mxu0 %vm1155_vm2, %v4040_v29  ;;  %3851 = vmatprep.mubr.msk.bf16.mxu1 %vm1155_vm2, %v4041_v30  ;;  %v4069_v29 = vld [vmem:[%s4285_s8 + $0x3d0] sm:$0xff]  }
  0xec   : > { %3724 = vmatmul.mubr.msk.bf16.gmra.mrb[88].mxu0 %vm1155_vm2, %v4042_v31  ;;  %3852 = vmatmul.mubr.msk.bf16.gmra.mrb[88].mxu1 %vm1155_vm2, %v4043_v32 }
  0xed   : > { %3727 = vmatprep.mubr.msk.bf16.mxu0 %vm1155_vm2, %v4044_v33  ;;  %3855 = vmatprep.mubr.msk.bf16.mxu1 %vm1155_vm2, %v4045_v34 }
  0xf4   : > { %3728 = vmatmul.mubr.msk.bf16.gmra.mrb[92].mxu0 %vm1155_vm2, %v4046_v35  ;;  %3856 = vmatmul.mubr.msk.bf16.gmra.mrb[92].mxu1 %vm1155_vm2, %v4047_v36 }
  0xf5   : > { %3731 = vmatprep.mubr.msk.bf16.mxu0 %vm1155_vm2, %v4048_v37  ;;  %3859 = vmatprep.mubr.msk.bf16.mxu1 %vm1155_vm2, %v4049_v38 }
  0xfc   : > { %3732 = vmatmul.mubr.msk.bf16.gmra.mrb[96].mxu0 %vm1155_vm2, %v4050_v39  ;;  %3860 = vmatmul.mubr.msk.bf16.gmra.mrb[96].mxu1 %vm1155_vm2, %v4051_v40 }
  0xfd   : > { %3735 = vmatprep.mubr.msk.bf16.mxu0 %vm1155_vm2, %v4052_v41  ;;  %3863 = vmatprep.mubr.msk.bf16.mxu1 %vm1155_vm2, %v4053_v42 }
 0x104   : > { %3736 = vmatmul.mubr.msk.bf16.gmra.mrb[100].mxu0 %vm1155_vm2, %v4054_v43  ;;  %3864 = vmatmul.mubr.msk.bf16.gmra.mrb[100].mxu1 %vm1155_vm2, %v4055_v44 }
 0x105   : > { %3739 = vmatprep.mubr.msk.bf16.mxu0 %vm1155_vm2, %v4056_v45  ;;  %3867 = vmatprep.mubr.msk.bf16.mxu1 %vm1155_vm2, %v4057_v46 }
 0x10c   : > { %3740 = vmatmul.mubr.msk.bf16.gmra.mrb[104].mxu0 %vm1155_vm2, %v4058_v47  ;;  %3868 = vmatmul.mubr.msk.bf16.gmra.mrb[104].mxu1 %vm1155_vm2, %v4059_v48 }
 0x10d   : > { %3743 = vmatprep.mubr.msk.bf16.mxu0 %vm1155_vm2, %v4060_v49  ;;  %3871 = vmatprep.mubr.msk.bf16.mxu1 %vm1155_vm2, %v4061_v50  ;;  %v4070_v50 = vld [vmem:[%s4285_s8 + $0x1d8] sm:$0xff]  }
 0x10f   : > { %v3637_v52 = vpop.f32.mrb[0].mxu0  ;;  %v3765_v53 = vpop.f32.mrb[0].mxu1 }
 0x110   : > { %v1590_v54 = vadd.f32 %v3637_v52, %v4516_v51  ;;  %v2102_v55 = vadd.f32 %v3765_v53, %v4516_v51  ;;  %v1581_v56 = vpop.f32.mrb[1].mxu0  ;;  %v2093_v57 = vpop.f32.mrb[1].mxu1  ;;  %v4071_v52 = vld [vmem:[%s4285_s8 + $0x3d8] sm:$0xff]  }
 0x111   : > { %v1582_v60 = vadd.f32 %v4516_v51, %v1581_v56  ;;  %v2094_v61 = vadd.f32 %v4516_v51, %v2093_v57  ;;  %v3638_v62 = vpop.f32.mrb[2].mxu0  ;;  %v3766_v63 = vpop.f32.mrb[2].mxu1  ;;  %v4072_v57 = vld [vmem:[%s4285_s8 + $0x1e0] sm:$0xff]  }
 0x112   : > { %v2606_v2 = vmax.f32 %v1590_v54, 0.0  ;;  %v2734_v3 = vmax.f32 %v2102_v55, 0.0  ;;  %v1593_v4 = vadd.f32 %v3638_v62, %v4516_v51  ;;  %v2105_v5 = vadd.f32 %v3766_v63, %v4516_v51  ;;  %v1584_v6 = vpop.f32.mrb[3].mxu0  ;;  %v2096_v7 = vpop.f32.mrb[3].mxu1 }
 0x113   : > { %v2604_v8 = vmax.f32 %v1582_v60, 0.0  ;;  %v2732_v9 = vmax.f32 %v2094_v61, 0.0  ;;  %v1585_v10 = vadd.f32 %v4516_v51, %v1584_v6  ;;  %v2097_v11 = vadd.f32 %v4516_v51, %v2096_v7 }
 0x114   : > { %2863 = vst.msk [vmem:[%s4527_s11 + $0x10] sm:$0xff] %vm2860_vm3, %v2606_v2  ;;  %2991 = vst.msk [vmem:[%s4527_s11 + $0x410] sm:$0xff] %vm2860_vm3, %v2734_v3  ;;  %v2607_v12 = vmax.f32 %v1593_v4, 0.0  ;;  %v2735_v13 = vmax.f32 %v2105_v5, 0.0  ;;  %3744 = vmatmul.mubr.msk.bf16.gmra.mrb[108].mxu0 %vm1155_vm2, %v4062_v58  ;;  %3872 = vmatmul.mubr.msk.bf16.gmra.mrb[108].mxu1 %vm1155_vm2, %v4063_v59  ;;  %v4073_v58 = vld [vmem:[%s4285_s8 + $0x3e0] sm:$0xff]  }
 0x115   : > { %2861 = vst.msk [vmem:[%s4527_s11] sm:$0xff] %vm2860_vm3, %v2604_v8  ;;  %2989 = vst.msk [vmem:[%s4527_s11 + $0x400] sm:$0xff] %vm2860_vm3, %v2732_v9  ;;  %v2605_v14 = vmax.f32 %v1585_v10, 0.0  ;;  %v2733_v15 = vmax.f32 %v2097_v11, 0.0  ;;  %3747 = vmatprep.mubr.msk.bf16.mxu0 %vm1155_vm2, %v4064_v0  ;;  %3875 = vmatprep.mubr.msk.bf16.mxu1 %vm1155_vm2, %v4065_v1 }
 0x116   : > { %2864 = vst.msk [vmem:[%s4527_s11 + $0x18] sm:$0xff] %vm2860_vm3, %v2607_v12  ;;  %2992 = vst.msk [vmem:[%s4527_s11 + $0x418] sm:$0xff] %vm2860_vm3, %v2735_v13 }
 0x117   : > { %2862 = vst.msk [vmem:[%s4527_s11 + $0x8] sm:$0xff] %vm2860_vm3, %v2605_v14  ;;  %2990 = vst.msk [vmem:[%s4527_s11 + $0x408] sm:$0xff] %vm2860_vm3, %v2733_v15  ;;  %v3641_v16 = vpop.f32.mrb[4].mxu0  ;;  %v3769_v17 = vpop.f32.mrb[4].mxu1  ;;  %v4074_v15 = vld [vmem:[%s4285_s8 + $0x1e8] sm:$0xff]  }
 0x118   : > { %v1606_v18 = vadd.f32 %v3641_v16, %v4516_v51  ;;  %v2118_v19 = vadd.f32 %v3769_v17, %v4516_v51  ;;  %v1597_v20 = vpop.f32.mrb[5].mxu0  ;;  %v2109_v21 = vpop.f32.mrb[5].mxu1  ;;  %v4075_v16 = vld [vmem:[%s4285_s8 + $0x3e8] sm:$0xff]  }
 0x119   : > { %v1598_v24 = vadd.f32 %v4516_v51, %v1597_v20  ;;  %v2110_v25 = vadd.f32 %v4516_v51, %v2109_v21  ;;  %v3642_v26 = vpop.f32.mrb[6].mxu0  ;;  %v3770_v27 = vpop.f32.mrb[6].mxu1  ;;  %v4076_v21 = vld [vmem:[%s4285_s8 + $0x1f0] sm:$0xff]  }
 0x11a   : > { %v2610_v30 = vmax.f32 %v1606_v18, 0.0  ;;  %v2738_v31 = vmax.f32 %v2118_v19, 0.0  ;;  %v1609_v32 = vadd.f32 %v3642_v26, %v4516_v51  ;;  %v2121_v33 = vadd.f32 %v3770_v27, %v4516_v51  ;;  %v1600_v34 = vpop.f32.mrb[7].mxu0  ;;  %v2112_v35 = vpop.f32.mrb[7].mxu1 }
 0x11b   : > { %v2608_v36 = vmax.f32 %v1598_v24, 0.0  ;;  %v2736_v37 = vmax.f32 %v2110_v25, 0.0  ;;  %v1601_v38 = vadd.f32 %v4516_v51, %v1600_v34  ;;  %v2113_v39 = vadd.f32 %v4516_v51, %v2112_v35 }
 0x11c   : > { %2867 = vst.msk [vmem:[%s4527_s11 + $0x30] sm:$0xff] %vm2860_vm3, %v2610_v30  ;;  %2995 = vst.msk [vmem:[%s4527_s11 + $0x430] sm:$0xff] %vm2860_vm3, %v2738_v31  ;;  %v2611_v40 = vmax.f32 %v1609_v32, 0.0  ;;  %v2739_v41 = vmax.f32 %v2121_v33, 0.0  ;;  %3748 = vmatmul.mubr.msk.bf16.gmra.mrb[112].mxu0 %vm1155_vm2, %v4066_v22  ;;  %3876 = vmatmul.mubr.msk.bf16.gmra.mrb[112].mxu1 %vm1155_vm2, %v4067_v23  ;;  %v4077_v22 = vld [vmem:[%s4285_s8 + $0x3f0] sm:$0xff]  }
 0x11d   : > { %2865 = vst.msk [vmem:[%s4527_s11 + $0x20] sm:$0xff] %vm2860_vm3, %v2608_v36  ;;  %2993 = vst.msk [vmem:[%s4527_s11 + $0x420] sm:$0xff] %vm2860_vm3, %v2736_v37  ;;  %v2609_v42 = vmax.f32 %v1601_v38, 0.0  ;;  %v2737_v43 = vmax.f32 %v2113_v39, 0.0  ;;  %3751 = vmatprep.mubr.msk.bf16.mxu0 %vm1155_vm2, %v4068_v28  ;;  %3879 = vmatprep.mubr.msk.bf16.mxu1 %vm1155_vm2, %v4069_v29 }
 0x11e   : > { %2868 = vst.msk [vmem:[%s4527_s11 + $0x38] sm:$0xff] %vm2860_vm3, %v2611_v40  ;;  %2996 = vst.msk [vmem:[%s4527_s11 + $0x438] sm:$0xff] %vm2860_vm3, %v2739_v41 }
 0x11f   : > { %2866 = vst.msk [vmem:[%s4527_s11 + $0x28] sm:$0xff] %vm2860_vm3, %v2609_v42  ;;  %2994 = vst.msk [vmem:[%s4527_s11 + $0x428] sm:$0xff] %vm2860_vm3, %v2737_v43  ;;  %v3645_v44 = vpop.f32.mrb[8].mxu0  ;;  %v3773_v45 = vpop.f32.mrb[8].mxu1  ;;  %v4078_v43 = vld [vmem:[%s4285_s8 + $0x1f8] sm:$0xff]  }
 0x120   : > { %v1622_v46 = vadd.f32 %v3645_v44, %v4516_v51  ;;  %v2134_v47 = vadd.f32 %v3773_v45, %v4516_v51  ;;  %v1613_v48 = vpop.f32.mrb[9].mxu0  ;;  %v2125_v49 = vpop.f32.mrb[9].mxu1  ;;  %v4079_v44 = vld [vmem:[%s4285_s8 + $0x3f8] sm:$0xff]  }
 0x121   : > { %v1614_v53 = vadd.f32 %v4516_v51, %v1613_v48  ;;  %v2126_v54 = vadd.f32 %v4516_v51, %v2125_v49  ;;  %v3646_v55 = vpop.f32.mrb[10].mxu0  ;;  %v3774_v56 = vpop.f32.mrb[10].mxu1 }
 0x122   : > { %v2614_v59 = vmax.f32 %v1622_v46, 0.0  ;;  %v2742_v60 = vmax.f32 %v2134_v47, 0.0  ;;  %v1625_v61 = vadd.f32 %v3646_v55, %v4516_v51  ;;  %v2137_v62 = vadd.f32 %v3774_v56, %v4516_v51  ;;  %v1616_v63 = vpop.f32.mrb[11].mxu0  ;;  %v2128_v0 = vpop.f32.mrb[11].mxu1 }
 0x123   : > { %v2612_v1 = vmax.f32 %v1614_v53, 0.0  ;;  %v2740_v2 = vmax.f32 %v2126_v54, 0.0  ;;  %v1617_v3 = vadd.f32 %v4516_v51, %v1616_v63  ;;  %v2129_v4 = vadd.f32 %v4516_v51, %v2128_v0 }
 0x124   : > { %2871 = vst.msk [vmem:[%s4527_s11 + $0x50] sm:$0xff] %vm2860_vm3, %v2614_v59  ;;  %2999 = vst.msk [vmem:[%s4527_s11 + $0x450] sm:$0xff] %vm2860_vm3, %v2742_v60  ;;  %v2615_v5 = vmax.f32 %v1625_v61, 0.0  ;;  %v2743_v6 = vmax.f32 %v2137_v62, 0.0  ;;  %3752 = vmatmul.mubr.msk.bf16.gmra.mrb[116].mxu0 %vm1155_vm2, %v4070_v50  ;;  %3880 = vmatmul.mubr.msk.bf16.gmra.mrb[116].mxu1 %vm1155_vm2, %v4071_v52 }
 0x125   : > { %2869 = vst.msk [vmem:[%s4527_s11 + $0x40] sm:$0xff] %vm2860_vm3, %v2612_v1  ;;  %2997 = vst.msk [vmem:[%s4527_s11 + $0x440] sm:$0xff] %vm2860_vm3, %v2740_v2  ;;  %v2613_v7 = vmax.f32 %v1617_v3, 0.0  ;;  %v2741_v8 = vmax.f32 %v2129_v4, 0.0  ;;  %3755 = vmatprep.mubr.msk.bf16.mxu0 %vm1155_vm2, %v4072_v57  ;;  %3883 = vmatprep.mubr.msk.bf16.mxu1 %vm1155_vm2, %v4073_v58 }
 0x126   : > { %2872 = vst.msk [vmem:[%s4527_s11 + $0x58] sm:$0xff] %vm2860_vm3, %v2615_v5  ;;  %3000 = vst.msk [vmem:[%s4527_s11 + $0x458] sm:$0xff] %vm2860_vm3, %v2743_v6 }
 0x127   : > { %2870 = vst.msk [vmem:[%s4527_s11 + $0x48] sm:$0xff] %vm2860_vm3, %v2613_v7  ;;  %2998 = vst.msk [vmem:[%s4527_s11 + $0x448] sm:$0xff] %vm2860_vm3, %v2741_v8  ;;  %v3649_v9 = vpop.f32.mrb[12].mxu0  ;;  %v3777_v10 = vpop.f32.mrb[12].mxu1 }
 0x128   : > { %v1638_v11 = vadd.f32 %v3649_v9, %v4516_v51  ;;  %v2150_v12 = vadd.f32 %v3777_v10, %v4516_v51  ;;  %v1629_v13 = vpop.f32.mrb[13].mxu0  ;;  %v2141_v14 = vpop.f32.mrb[13].mxu1 }
 0x129   : > { %v1630_v17 = vadd.f32 %v4516_v51, %v1629_v13  ;;  %v2142_v18 = vadd.f32 %v4516_v51, %v2141_v14  ;;  %v3650_v19 = vpop.f32.mrb[14].mxu0  ;;  %v3778_v20 = vpop.f32.mrb[14].mxu1 }
 0x12a   : > { %v2618_v23 = vmax.f32 %v1638_v11, 0.0  ;;  %v2746_v24 = vmax.f32 %v2150_v12, 0.0  ;;  %v1641_v25 = vadd.f32 %v3650_v19, %v4516_v51  ;;  %v2153_v26 = vadd.f32 %v3778_v20, %v4516_v51  ;;  %v1632_v27 = vpop.f32.mrb[15].mxu0  ;;  %v2144_v28 = vpop.f32.mrb[15].mxu1 }
 0x12b   : > { %v2616_v29 = vmax.f32 %v1630_v17, 0.0  ;;  %v2744_v30 = vmax.f32 %v2142_v18, 0.0  ;;  %v1633_v31 = vadd.f32 %v4516_v51, %v1632_v27  ;;  %v2145_v32 = vadd.f32 %v4516_v51, %v2144_v28 }
 0x12c   : > { %2875 = vst.msk [vmem:[%s4527_s11 + $0x70] sm:$0xff] %vm2860_vm3, %v2618_v23  ;;  %3003 = vst.msk [vmem:[%s4527_s11 + $0x470] sm:$0xff] %vm2860_vm3, %v2746_v24  ;;  %v2619_v33 = vmax.f32 %v1641_v25, 0.0  ;;  %v2747_v34 = vmax.f32 %v2153_v26, 0.0  ;;  %3756 = vmatmul.mubr.msk.bf16.gmra.mrb[120].mxu0 %vm1155_vm2, %v4074_v15  ;;  %3884 = vmatmul.mubr.msk.bf16.gmra.mrb[120].mxu1 %vm1155_vm2, %v4075_v16 }
 0x12d   : > { %2873 = vst.msk [vmem:[%s4527_s11 + $0x60] sm:$0xff] %vm2860_vm3, %v2616_v29  ;;  %3001 = vst.msk [vmem:[%s4527_s11 + $0x460] sm:$0xff] %vm2860_vm3, %v2744_v30  ;;  %v2617_v35 = vmax.f32 %v1633_v31, 0.0  ;;  %v2745_v36 = vmax.f32 %v2145_v32, 0.0  ;;  %3759 = vmatprep.mubr.msk.bf16.mxu0 %vm1155_vm2, %v4076_v21  ;;  %3887 = vmatprep.mubr.msk.bf16.mxu1 %vm1155_vm2, %v4077_v22 }
 0x12e   : > { %2876 = vst.msk [vmem:[%s4527_s11 + $0x78] sm:$0xff] %vm2860_vm3, %v2619_v33  ;;  %3004 = vst.msk [vmem:[%s4527_s11 + $0x478] sm:$0xff] %vm2860_vm3, %v2747_v34 }
 0x12f   : > { %2874 = vst.msk [vmem:[%s4527_s11 + $0x68] sm:$0xff] %vm2860_vm3, %v2617_v35  ;;  %3002 = vst.msk [vmem:[%s4527_s11 + $0x468] sm:$0xff] %vm2860_vm3, %v2745_v36  ;;  %v3653_v37 = vpop.f32.mrb[16].mxu0  ;;  %v3781_v38 = vpop.f32.mrb[16].mxu1 }
 0x130   : > { %v1654_v39 = vadd.f32 %v3653_v37, %v4516_v51  ;;  %v2166_v40 = vadd.f32 %v3781_v38, %v4516_v51  ;;  %v1645_v41 = vpop.f32.mrb[17].mxu0  ;;  %v2157_v42 = vpop.f32.mrb[17].mxu1 }
 0x131   : > { %v1646_v45 = vadd.f32 %v4516_v51, %v1645_v41  ;;  %v2158_v46 = vadd.f32 %v4516_v51, %v2157_v42  ;;  %v3654_v47 = vpop.f32.mrb[18].mxu0  ;;  %v3782_v48 = vpop.f32.mrb[18].mxu1 }
 0x132   : > { %v2622_v49 = vmax.f32 %v1654_v39, 0.0  ;;  %v2750_v50 = vmax.f32 %v2166_v40, 0.0  ;;  %v1657_v52 = vadd.f32 %v3654_v47, %v4516_v51  ;;  %v2169_v53 = vadd.f32 %v3782_v48, %v4516_v51  ;;  %v1648_v54 = vpop.f32.mrb[19].mxu0  ;;  %v2160_v55 = vpop.f32.mrb[19].mxu1 }
 0x133   : > { %v2620_v56 = vmax.f32 %v1646_v45, 0.0  ;;  %v2748_v57 = vmax.f32 %v2158_v46, 0.0  ;;  %v1649_v58 = vadd.f32 %v4516_v51, %v1648_v54  ;;  %v2161_v59 = vadd.f32 %v4516_v51, %v2160_v55 }
 0x134   : > { %2879 = vst.msk [vmem:[%s4527_s11 + $0x90] sm:$0xff] %vm2860_vm3, %v2622_v49  ;;  %3007 = vst.msk [vmem:[%s4527_s11 + $0x490] sm:$0xff] %vm2860_vm3, %v2750_v50  ;;  %v2623_v60 = vmax.f32 %v1657_v52, 0.0  ;;  %v2751_v61 = vmax.f32 %v2169_v53, 0.0  ;;  %3760 = vmatmul.mubr.msk.bf16.gmra.mrb[124].mxu0 %vm1155_vm2, %v4078_v43  ;;  %3888 = vmatmul.mubr.msk.bf16.gmra.mrb[124].mxu1 %vm1155_vm2, %v4079_v44 }
 0x135   : > { %2877 = vst.msk [vmem:[%s4527_s11 + $0x80] sm:$0xff] %vm2860_vm3, %v2620_v56  ;;  %3005 = vst.msk [vmem:[%s4527_s11 + $0x480] sm:$0xff] %vm2860_vm3, %v2748_v57  ;;  %v2621_v62 = vmax.f32 %v1649_v58, 0.0  ;;  %v2749_v63 = vmax.f32 %v2161_v59, 0.0 }
 0x136   : > { %2880 = vst.msk [vmem:[%s4527_s11 + $0x98] sm:$0xff] %vm2860_vm3, %v2623_v60  ;;  %3008 = vst.msk [vmem:[%s4527_s11 + $0x498] sm:$0xff] %vm2860_vm3, %v2751_v61 }
 0x137   : > { %2878 = vst.msk [vmem:[%s4527_s11 + $0x88] sm:$0xff] %vm2860_vm3, %v2621_v62  ;;  %3006 = vst.msk [vmem:[%s4527_s11 + $0x488] sm:$0xff] %vm2860_vm3, %v2749_v63  ;;  %v3657_v0 = vpop.f32.mrb[20].mxu0  ;;  %v3785_v1 = vpop.f32.mrb[20].mxu1 }
 0x138   : > { %v1670_v2 = vadd.f32 %v3657_v0, %v4516_v51  ;;  %v2182_v3 = vadd.f32 %v3785_v1, %v4516_v51  ;;  %v1661_v4 = vpop.f32.mrb[21].mxu0  ;;  %v2173_v5 = vpop.f32.mrb[21].mxu1 }
 0x139   : > { %v1662_v6 = vadd.f32 %v4516_v51, %v1661_v4  ;;  %v2174_v7 = vadd.f32 %v4516_v51, %v2173_v5  ;;  %v3658_v8 = vpop.f32.mrb[22].mxu0  ;;  %v3786_v9 = vpop.f32.mrb[22].mxu1 }
 0x13a   : > { %v2626_v10 = vmax.f32 %v1670_v2, 0.0  ;;  %v2754_v11 = vmax.f32 %v2182_v3, 0.0  ;;  %v1673_v12 = vadd.f32 %v3658_v8, %v4516_v51  ;;  %v2185_v13 = vadd.f32 %v3786_v9, %v4516_v51  ;;  %v1664_v14 = vpop.f32.mrb[23].mxu0  ;;  %v2176_v15 = vpop.f32.mrb[23].mxu1 }
 0x13b   : > { %v2624_v16 = vmax.f32 %v1662_v6, 0.0  ;;  %v2752_v17 = vmax.f32 %v2174_v7, 0.0  ;;  %v1665_v18 = vadd.f32 %v4516_v51, %v1664_v14  ;;  %v2177_v19 = vadd.f32 %v4516_v51, %v2176_v15 }
 0x13c   : > { %2883 = vst.msk [vmem:[%s4527_s11 + $0xb0] sm:$0xff] %vm2860_vm3, %v2626_v10  ;;  %3011 = vst.msk [vmem:[%s4527_s11 + $0x4b0] sm:$0xff] %vm2860_vm3, %v2754_v11  ;;  %v2627_v20 = vmax.f32 %v1673_v12, 0.0  ;;  %v2755_v21 = vmax.f32 %v2185_v13, 0.0 }
 0x13d   : > { %2881 = vst.msk [vmem:[%s4527_s11 + $0xa0] sm:$0xff] %vm2860_vm3, %v2624_v16  ;;  %3009 = vst.msk [vmem:[%s4527_s11 + $0x4a0] sm:$0xff] %vm2860_vm3, %v2752_v17  ;;  %v2625_v22 = vmax.f32 %v1665_v18, 0.0  ;;  %v2753_v23 = vmax.f32 %v2177_v19, 0.0 }
 0x13e   : > { %2884 = vst.msk [vmem:[%s4527_s11 + $0xb8] sm:$0xff] %vm2860_vm3, %v2627_v20  ;;  %3012 = vst.msk [vmem:[%s4527_s11 + $0x4b8] sm:$0xff] %vm2860_vm3, %v2755_v21 }
 0x13f   : > { %2882 = vst.msk [vmem:[%s4527_s11 + $0xa8] sm:$0xff] %vm2860_vm3, %v2625_v22  ;;  %3010 = vst.msk [vmem:[%s4527_s11 + $0x4a8] sm:$0xff] %vm2860_vm3, %v2753_v23  ;;  %v3661_v24 = vpop.f32.mrb[24].mxu0  ;;  %v3789_v25 = vpop.f32.mrb[24].mxu1 }
 0x140   : > { %v1686_v26 = vadd.f32 %v3661_v24, %v4516_v51  ;;  %v2198_v27 = vadd.f32 %v3789_v25, %v4516_v51  ;;  %v1677_v28 = vpop.f32.mrb[25].mxu0  ;;  %v2189_v29 = vpop.f32.mrb[25].mxu1 }
 0x141   : > { %v1678_v30 = vadd.f32 %v4516_v51, %v1677_v28  ;;  %v2190_v31 = vadd.f32 %v4516_v51, %v2189_v29  ;;  %v3662_v32 = vpop.f32.mrb[26].mxu0  ;;  %v3790_v33 = vpop.f32.mrb[26].mxu1 }
 0x142   : > { %v2630_v34 = vmax.f32 %v1686_v26, 0.0  ;;  %v2758_v35 = vmax.f32 %v2198_v27, 0.0  ;;  %v1689_v36 = vadd.f32 %v3662_v32, %v4516_v51  ;;  %v2201_v37 = vadd.f32 %v3790_v33, %v4516_v51  ;;  %v1680_v38 = vpop.f32.mrb[27].mxu0  ;;  %v2192_v39 = vpop.f32.mrb[27].mxu1 }
 0x143   : > { %v2628_v40 = vmax.f32 %v1678_v30, 0.0  ;;  %v2756_v41 = vmax.f32 %v2190_v31, 0.0  ;;  %v1681_v42 = vadd.f32 %v4516_v51, %v1680_v38  ;;  %v2193_v43 = vadd.f32 %v4516_v51, %v2192_v39 }
 0x144   : > { %2887 = vst.msk [vmem:[%s4527_s11 + $0xd0] sm:$0xff] %vm2860_vm3, %v2630_v34  ;;  %3015 = vst.msk [vmem:[%s4527_s11 + $0x4d0] sm:$0xff] %vm2860_vm3, %v2758_v35  ;;  %v2631_v44 = vmax.f32 %v1689_v36, 0.0  ;;  %v2759_v45 = vmax.f32 %v2201_v37, 0.0 }
 0x145   : > { %2885 = vst.msk [vmem:[%s4527_s11 + $0xc0] sm:$0xff] %vm2860_vm3, %v2628_v40  ;;  %3013 = vst.msk [vmem:[%s4527_s11 + $0x4c0] sm:$0xff] %vm2860_vm3, %v2756_v41  ;;  %v2629_v46 = vmax.f32 %v1681_v42, 0.0  ;;  %v2757_v47 = vmax.f32 %v2193_v43, 0.0 }
 0x146   : > { %2888 = vst.msk [vmem:[%s4527_s11 + $0xd8] sm:$0xff] %vm2860_vm3, %v2631_v44  ;;  %3016 = vst.msk [vmem:[%s4527_s11 + $0x4d8] sm:$0xff] %vm2860_vm3, %v2759_v45 }
 0x147   : > { %2886 = vst.msk [vmem:[%s4527_s11 + $0xc8] sm:$0xff] %vm2860_vm3, %v2629_v46  ;;  %3014 = vst.msk [vmem:[%s4527_s11 + $0x4c8] sm:$0xff] %vm2860_vm3, %v2757_v47  ;;  %v3665_v48 = vpop.f32.mrb[28].mxu0  ;;  %v3793_v49 = vpop.f32.mrb[28].mxu1 }
 0x148   : > { %v1702_v50 = vadd.f32 %v3665_v48, %v4516_v51  ;;  %v2214_v52 = vadd.f32 %v3793_v49, %v4516_v51  ;;  %v1693_v53 = vpop.f32.mrb[29].mxu0  ;;  %v2205_v54 = vpop.f32.mrb[29].mxu1 }
 0x149   : > { %v1694_v55 = vadd.f32 %v4516_v51, %v1693_v53  ;;  %v2206_v56 = vadd.f32 %v4516_v51, %v2205_v54  ;;  %v3666_v57 = vpop.f32.mrb[30].mxu0  ;;  %v3794_v58 = vpop.f32.mrb[30].mxu1 }
 0x14a   : > { %v2634_v59 = vmax.f32 %v1702_v50, 0.0  ;;  %v2762_v60 = vmax.f32 %v2214_v52, 0.0  ;;  %v1705_v61 = vadd.f32 %v3666_v57, %v4516_v51  ;;  %v2217_v62 = vadd.f32 %v3794_v58, %v4516_v51  ;;  %v1696_v63 = vpop.f32.mrb[31].mxu0  ;;  %v2208_v0 = vpop.f32.mrb[31].mxu1 }
 0x14b   : > { %v2632_v1 = vmax.f32 %v1694_v55, 0.0  ;;  %v2760_v2 = vmax.f32 %v2206_v56, 0.0  ;;  %v1697_v3 = vadd.f32 %v4516_v51, %v1696_v63  ;;  %v2209_v4 = vadd.f32 %v4516_v51, %v2208_v0 }
 0x14c   : > { %2891 = vst.msk [vmem:[%s4527_s11 + $0xf0] sm:$0xff] %vm2860_vm3, %v2634_v59  ;;  %3019 = vst.msk [vmem:[%s4527_s11 + $0x4f0] sm:$0xff] %vm2860_vm3, %v2762_v60  ;;  %v2635_v5 = vmax.f32 %v1705_v61, 0.0  ;;  %v2763_v6 = vmax.f32 %v2217_v62, 0.0 }
 0x14d   : > { %2889 = vst.msk [vmem:[%s4527_s11 + $0xe0] sm:$0xff] %vm2860_vm3, %v2632_v1  ;;  %3017 = vst.msk [vmem:[%s4527_s11 + $0x4e0] sm:$0xff] %vm2860_vm3, %v2760_v2  ;;  %v2633_v7 = vmax.f32 %v1697_v3, 0.0  ;;  %v2761_v8 = vmax.f32 %v2209_v4, 0.0 }
 0x14e   : > { %2892 = vst.msk [vmem:[%s4527_s11 + $0xf8] sm:$0xff] %vm2860_vm3, %v2635_v5  ;;  %3020 = vst.msk [vmem:[%s4527_s11 + $0x4f8] sm:$0xff] %vm2860_vm3, %v2763_v6 }
 0x14f   : > { %2890 = vst.msk [vmem:[%s4527_s11 + $0xe8] sm:$0xff] %vm2860_vm3, %v2633_v7  ;;  %3018 = vst.msk [vmem:[%s4527_s11 + $0x4e8] sm:$0xff] %vm2860_vm3, %v2761_v8  ;;  %v3669_v9 = vpop.f32.mrb[32].mxu0  ;;  %v3797_v10 = vpop.f32.mrb[32].mxu1 }
 0x150   : > { %v1718_v11 = vadd.f32 %v3669_v9, %v4516_v51  ;;  %v2230_v12 = vadd.f32 %v3797_v10, %v4516_v51  ;;  %v1709_v13 = vpop.f32.mrb[33].mxu0  ;;  %v2221_v14 = vpop.f32.mrb[33].mxu1 }
 0x151   : > { %v1710_v15 = vadd.f32 %v4516_v51, %v1709_v13  ;;  %v2222_v16 = vadd.f32 %v4516_v51, %v2221_v14  ;;  %v3670_v17 = vpop.f32.mrb[34].mxu0  ;;  %v3798_v18 = vpop.f32.mrb[34].mxu1 }
 0x152   : > { %v2638_v19 = vmax.f32 %v1718_v11, 0.0  ;;  %v2766_v20 = vmax.f32 %v2230_v12, 0.0  ;;  %v1721_v21 = vadd.f32 %v3670_v17, %v4516_v51  ;;  %v2233_v22 = vadd.f32 %v3798_v18, %v4516_v51  ;;  %v1712_v23 = vpop.f32.mrb[35].mxu0  ;;  %v2224_v24 = vpop.f32.mrb[35].mxu1 }
 0x153   : > { %v2636_v25 = vmax.f32 %v1710_v15, 0.0  ;;  %v2764_v26 = vmax.f32 %v2222_v16, 0.0  ;;  %v1713_v27 = vadd.f32 %v4516_v51, %v1712_v23  ;;  %v2225_v28 = vadd.f32 %v4516_v51, %v2224_v24 }
 0x154   : > { %2895 = vst.msk [vmem:[%s4527_s11 + $0x110] sm:$0xff] %vm2860_vm3, %v2638_v19  ;;  %3023 = vst.msk [vmem:[%s4527_s11 + $0x510] sm:$0xff] %vm2860_vm3, %v2766_v20  ;;  %v2639_v29 = vmax.f32 %v1721_v21, 0.0  ;;  %v2767_v30 = vmax.f32 %v2233_v22, 0.0 }
 0x155   : > { %2893 = vst.msk [vmem:[%s4527_s11 + $0x100] sm:$0xff] %vm2860_vm3, %v2636_v25  ;;  %3021 = vst.msk [vmem:[%s4527_s11 + $0x500] sm:$0xff] %vm2860_vm3, %v2764_v26  ;;  %v2637_v31 = vmax.f32 %v1713_v27, 0.0  ;;  %v2765_v32 = vmax.f32 %v2225_v28, 0.0 }
 0x156   : > { %2896 = vst.msk [vmem:[%s4527_s11 + $0x118] sm:$0xff] %vm2860_vm3, %v2639_v29  ;;  %3024 = vst.msk [vmem:[%s4527_s11 + $0x518] sm:$0xff] %vm2860_vm3, %v2767_v30 }
 0x157   : > { %2894 = vst.msk [vmem:[%s4527_s11 + $0x108] sm:$0xff] %vm2860_vm3, %v2637_v31  ;;  %3022 = vst.msk [vmem:[%s4527_s11 + $0x508] sm:$0xff] %vm2860_vm3, %v2765_v32  ;;  %v3673_v33 = vpop.f32.mrb[36].mxu0  ;;  %v3801_v34 = vpop.f32.mrb[36].mxu1 }
 0x158   : > { %v1734_v35 = vadd.f32 %v3673_v33, %v4516_v51  ;;  %v2246_v36 = vadd.f32 %v3801_v34, %v4516_v51  ;;  %v1725_v37 = vpop.f32.mrb[37].mxu0  ;;  %v2237_v38 = vpop.f32.mrb[37].mxu1 }
 0x159   : > { %v1726_v39 = vadd.f32 %v4516_v51, %v1725_v37  ;;  %v2238_v40 = vadd.f32 %v4516_v51, %v2237_v38  ;;  %v3674_v41 = vpop.f32.mrb[38].mxu0  ;;  %v3802_v42 = vpop.f32.mrb[38].mxu1 }
 0x15a   : > { %v2642_v43 = vmax.f32 %v1734_v35, 0.0  ;;  %v2770_v44 = vmax.f32 %v2246_v36, 0.0  ;;  %v1737_v45 = vadd.f32 %v3674_v41, %v4516_v51  ;;  %v2249_v46 = vadd.f32 %v3802_v42, %v4516_v51  ;;  %v1728_v47 = vpop.f32.mrb[39].mxu0  ;;  %v2240_v48 = vpop.f32.mrb[39].mxu1 }
 0x15b   : > { %v2640_v49 = vmax.f32 %v1726_v39, 0.0  ;;  %v2768_v50 = vmax.f32 %v2238_v40, 0.0  ;;  %v1729_v52 = vadd.f32 %v4516_v51, %v1728_v47  ;;  %v2241_v53 = vadd.f32 %v4516_v51, %v2240_v48 }
 0x15c   : > { %2899 = vst.msk [vmem:[%s4527_s11 + $0x130] sm:$0xff] %vm2860_vm3, %v2642_v43  ;;  %3027 = vst.msk [vmem:[%s4527_s11 + $0x530] sm:$0xff] %vm2860_vm3, %v2770_v44  ;;  %v2643_v54 = vmax.f32 %v1737_v45, 0.0  ;;  %v2771_v55 = vmax.f32 %v2249_v46, 0.0 }
 0x15d   : > { %2897 = vst.msk [vmem:[%s4527_s11 + $0x120] sm:$0xff] %vm2860_vm3, %v2640_v49  ;;  %3025 = vst.msk [vmem:[%s4527_s11 + $0x520] sm:$0xff] %vm2860_vm3, %v2768_v50  ;;  %v2641_v56 = vmax.f32 %v1729_v52, 0.0  ;;  %v2769_v57 = vmax.f32 %v2241_v53, 0.0 }
 0x15e   : > { %2900 = vst.msk [vmem:[%s4527_s11 + $0x138] sm:$0xff] %vm2860_vm3, %v2643_v54  ;;  %3028 = vst.msk [vmem:[%s4527_s11 + $0x538] sm:$0xff] %vm2860_vm3, %v2771_v55 }
 0x15f   : > { %2898 = vst.msk [vmem:[%s4527_s11 + $0x128] sm:$0xff] %vm2860_vm3, %v2641_v56  ;;  %3026 = vst.msk [vmem:[%s4527_s11 + $0x528] sm:$0xff] %vm2860_vm3, %v2769_v57  ;;  %v3677_v58 = vpop.f32.mrb[40].mxu0  ;;  %v3805_v59 = vpop.f32.mrb[40].mxu1 }
 0x160   : > { %v1750_v60 = vadd.f32 %v3677_v58, %v4516_v51  ;;  %v2262_v61 = vadd.f32 %v3805_v59, %v4516_v51  ;;  %v1741_v62 = vpop.f32.mrb[41].mxu0  ;;  %v2253_v63 = vpop.f32.mrb[41].mxu1 }
 0x161   : > { %v1742_v0 = vadd.f32 %v4516_v51, %v1741_v62  ;;  %v2254_v1 = vadd.f32 %v4516_v51, %v2253_v63  ;;  %v3678_v2 = vpop.f32.mrb[42].mxu0  ;;  %v3806_v3 = vpop.f32.mrb[42].mxu1 }
 0x162   : > { %v2646_v4 = vmax.f32 %v1750_v60, 0.0  ;;  %v2774_v5 = vmax.f32 %v2262_v61, 0.0  ;;  %v1753_v6 = vadd.f32 %v3678_v2, %v4516_v51  ;;  %v2265_v7 = vadd.f32 %v3806_v3, %v4516_v51  ;;  %v1744_v8 = vpop.f32.mrb[43].mxu0  ;;  %v2256_v9 = vpop.f32.mrb[43].mxu1 }
 0x163   : > { %v2644_v10 = vmax.f32 %v1742_v0, 0.0  ;;  %v2772_v11 = vmax.f32 %v2254_v1, 0.0  ;;  %v1745_v12 = vadd.f32 %v4516_v51, %v1744_v8  ;;  %v2257_v13 = vadd.f32 %v4516_v51, %v2256_v9 }
 0x164   : > { %2903 = vst.msk [vmem:[%s4527_s11 + $0x150] sm:$0xff] %vm2860_vm3, %v2646_v4  ;;  %3031 = vst.msk [vmem:[%s4527_s11 + $0x550] sm:$0xff] %vm2860_vm3, %v2774_v5  ;;  %v2647_v14 = vmax.f32 %v1753_v6, 0.0  ;;  %v2775_v15 = vmax.f32 %v2265_v7, 0.0 }
 0x165   : > { %2901 = vst.msk [vmem:[%s4527_s11 + $0x140] sm:$0xff] %vm2860_vm3, %v2644_v10  ;;  %3029 = vst.msk [vmem:[%s4527_s11 + $0x540] sm:$0xff] %vm2860_vm3, %v2772_v11  ;;  %v2645_v16 = vmax.f32 %v1745_v12, 0.0  ;;  %v2773_v17 = vmax.f32 %v2257_v13, 0.0 }
 0x166   : > { %2904 = vst.msk [vmem:[%s4527_s11 + $0x158] sm:$0xff] %vm2860_vm3, %v2647_v14  ;;  %3032 = vst.msk [vmem:[%s4527_s11 + $0x558] sm:$0xff] %vm2860_vm3, %v2775_v15 }
 0x167   : > { %2902 = vst.msk [vmem:[%s4527_s11 + $0x148] sm:$0xff] %vm2860_vm3, %v2645_v16  ;;  %3030 = vst.msk [vmem:[%s4527_s11 + $0x548] sm:$0xff] %vm2860_vm3, %v2773_v17  ;;  %v3681_v18 = vpop.f32.mrb[44].mxu0  ;;  %v3809_v19 = vpop.f32.mrb[44].mxu1 }
 0x168   : > { %v1766_v20 = vadd.f32 %v3681_v18, %v4516_v51  ;;  %v2278_v21 = vadd.f32 %v3809_v19, %v4516_v51  ;;  %v1757_v22 = vpop.f32.mrb[45].mxu0  ;;  %v2269_v23 = vpop.f32.mrb[45].mxu1 }
 0x169   : > { %v1758_v24 = vadd.f32 %v4516_v51, %v1757_v22  ;;  %v2270_v25 = vadd.f32 %v4516_v51, %v2269_v23  ;;  %v3682_v26 = vpop.f32.mrb[46].mxu0  ;;  %v3810_v27 = vpop.f32.mrb[46].mxu1 }
 0x16a   : > { %v2650_v28 = vmax.f32 %v1766_v20, 0.0  ;;  %v2778_v29 = vmax.f32 %v2278_v21, 0.0  ;;  %v1769_v30 = vadd.f32 %v3682_v26, %v4516_v51  ;;  %v2281_v31 = vadd.f32 %v3810_v27, %v4516_v51  ;;  %v1760_v32 = vpop.f32.mrb[47].mxu0  ;;  %v2272_v33 = vpop.f32.mrb[47].mxu1 }
 0x16b   : > { %v2648_v34 = vmax.f32 %v1758_v24, 0.0  ;;  %v2776_v35 = vmax.f32 %v2270_v25, 0.0  ;;  %v1761_v36 = vadd.f32 %v4516_v51, %v1760_v32  ;;  %v2273_v37 = vadd.f32 %v4516_v51, %v2272_v33 }
 0x16c   : > { %2907 = vst.msk [vmem:[%s4527_s11 + $0x170] sm:$0xff] %vm2860_vm3, %v2650_v28  ;;  %3035 = vst.msk [vmem:[%s4527_s11 + $0x570] sm:$0xff] %vm2860_vm3, %v2778_v29  ;;  %v2651_v38 = vmax.f32 %v1769_v30, 0.0  ;;  %v2779_v39 = vmax.f32 %v2281_v31, 0.0 }
 0x16d   : > { %2905 = vst.msk [vmem:[%s4527_s11 + $0x160] sm:$0xff] %vm2860_vm3, %v2648_v34  ;;  %3033 = vst.msk [vmem:[%s4527_s11 + $0x560] sm:$0xff] %vm2860_vm3, %v2776_v35  ;;  %v2649_v40 = vmax.f32 %v1761_v36, 0.0  ;;  %v2777_v41 = vmax.f32 %v2273_v37, 0.0 }
 0x16e   : > { %2908 = vst.msk [vmem:[%s4527_s11 + $0x178] sm:$0xff] %vm2860_vm3, %v2651_v38  ;;  %3036 = vst.msk [vmem:[%s4527_s11 + $0x578] sm:$0xff] %vm2860_vm3, %v2779_v39 }
 0x16f   : > { %2906 = vst.msk [vmem:[%s4527_s11 + $0x168] sm:$0xff] %vm2860_vm3, %v2649_v40  ;;  %3034 = vst.msk [vmem:[%s4527_s11 + $0x568] sm:$0xff] %vm2860_vm3, %v2777_v41  ;;  %v3685_v42 = vpop.f32.mrb[48].mxu0  ;;  %v3813_v43 = vpop.f32.mrb[48].mxu1 }
 0x170   : > { %v1782_v44 = vadd.f32 %v3685_v42, %v4516_v51  ;;  %v2294_v45 = vadd.f32 %v3813_v43, %v4516_v51  ;;  %v1773_v46 = vpop.f32.mrb[49].mxu0  ;;  %v2285_v47 = vpop.f32.mrb[49].mxu1 }
 0x171   : > { %v1774_v48 = vadd.f32 %v4516_v51, %v1773_v46  ;;  %v2286_v49 = vadd.f32 %v4516_v51, %v2285_v47  ;;  %v3686_v50 = vpop.f32.mrb[50].mxu0  ;;  %v3814_v52 = vpop.f32.mrb[50].mxu1 }
 0x172   : > { %v2654_v53 = vmax.f32 %v1782_v44, 0.0  ;;  %v2782_v54 = vmax.f32 %v2294_v45, 0.0  ;;  %v1785_v55 = vadd.f32 %v3686_v50, %v4516_v51  ;;  %v2297_v56 = vadd.f32 %v3814_v52, %v4516_v51  ;;  %v1776_v57 = vpop.f32.mrb[51].mxu0  ;;  %v2288_v58 = vpop.f32.mrb[51].mxu1 }
 0x173   : > { %v2652_v59 = vmax.f32 %v1774_v48, 0.0  ;;  %v2780_v60 = vmax.f32 %v2286_v49, 0.0  ;;  %v1777_v61 = vadd.f32 %v4516_v51, %v1776_v57  ;;  %v2289_v62 = vadd.f32 %v4516_v51, %v2288_v58 }
 0x174   : > { %2911 = vst.msk [vmem:[%s4527_s11 + $0x190] sm:$0xff] %vm2860_vm3, %v2654_v53  ;;  %3039 = vst.msk [vmem:[%s4527_s11 + $0x590] sm:$0xff] %vm2860_vm3, %v2782_v54  ;;  %v2655_v63 = vmax.f32 %v1785_v55, 0.0  ;;  %v2783_v0 = vmax.f32 %v2297_v56, 0.0  ;;  %v4924_v53 = vld [vmem:[%s5349_s2] ss:$0 sm:$0xff] }
 0x175   : > { %2909 = vst.msk [vmem:[%s4527_s11 + $0x180] sm:$0xff] %vm2860_vm3, %v2652_v59  ;;  %3037 = vst.msk [vmem:[%s4527_s11 + $0x580] sm:$0xff] %vm2860_vm3, %v2780_v60  ;;  %v2653_v1 = vmax.f32 %v1777_v61, 0.0  ;;  %v2781_v2 = vmax.f32 %v2289_v62, 0.0 }
 0x176   : > { %2912 = vst.msk [vmem:[%s4527_s11 + $0x198] sm:$0xff] %vm2860_vm3, %v2655_v63  ;;  %3040 = vst.msk [vmem:[%s4527_s11 + $0x598] sm:$0xff] %vm2860_vm3, %v2783_v0 }
 0x177   : > { %2910 = vst.msk [vmem:[%s4527_s11 + $0x188] sm:$0xff] %vm2860_vm3, %v2653_v1  ;;  %3038 = vst.msk [vmem:[%s4527_s11 + $0x588] sm:$0xff] %vm2860_vm3, %v2781_v2  ;;  %v3689_v3 = vpop.f32.mrb[52].mxu0  ;;  %v3817_v4 = vpop.f32.mrb[52].mxu1 }
 0x178   : > { %v1798_v5 = vadd.f32 %v3689_v3, %v4516_v51  ;;  %v2310_v6 = vadd.f32 %v3817_v4, %v4516_v51  ;;  %v1789_v7 = vpop.f32.mrb[53].mxu0  ;;  %v2301_v8 = vpop.f32.mrb[53].mxu1 }
 0x179   : > { %v1790_v9 = vadd.f32 %v4516_v51, %v1789_v7  ;;  %v2302_v10 = vadd.f32 %v4516_v51, %v2301_v8  ;;  %v3690_v11 = vpop.f32.mrb[54].mxu0  ;;  %v3818_v12 = vpop.f32.mrb[54].mxu1 }
 0x17a   : > { %v2658_v13 = vmax.f32 %v1798_v5, 0.0  ;;  %v2786_v14 = vmax.f32 %v2310_v6, 0.0  ;;  %v1801_v15 = vadd.f32 %v3690_v11, %v4516_v51  ;;  %v2313_v16 = vadd.f32 %v3818_v12, %v4516_v51  ;;  %v1792_v17 = vpop.f32.mrb[55].mxu0  ;;  %v2304_v18 = vpop.f32.mrb[55].mxu1 }
 0x17b   : > { %v2656_v19 = vmax.f32 %v1790_v9, 0.0  ;;  %v2784_v20 = vmax.f32 %v2302_v10, 0.0  ;;  %v1793_v21 = vadd.f32 %v4516_v51, %v1792_v17  ;;  %v2305_v22 = vadd.f32 %v4516_v51, %v2304_v18 }
 0x17c   : > { %2915 = vst.msk [vmem:[%s4527_s11 + $0x1b0] sm:$0xff] %vm2860_vm3, %v2658_v13  ;;  %3043 = vst.msk [vmem:[%s4527_s11 + $0x5b0] sm:$0xff] %vm2860_vm3, %v2786_v14  ;;  %v2659_v23 = vmax.f32 %v1801_v15, 0.0  ;;  %v2787_v24 = vmax.f32 %v2313_v16, 0.0 }
 0x17d   : > { %2913 = vst.msk [vmem:[%s4527_s11 + $0x1a0] sm:$0xff] %vm2860_vm3, %v2656_v19  ;;  %3041 = vst.msk [vmem:[%s4527_s11 + $0x5a0] sm:$0xff] %vm2860_vm3, %v2784_v20  ;;  %v2657_v25 = vmax.f32 %v1793_v21, 0.0  ;;  %v2785_v26 = vmax.f32 %v2305_v22, 0.0 }
 0x17e   : > { %2916 = vst.msk [vmem:[%s4527_s11 + $0x1b8] sm:$0xff] %vm2860_vm3, %v2659_v23  ;;  %3044 = vst.msk [vmem:[%s4527_s11 + $0x5b8] sm:$0xff] %vm2860_vm3, %v2787_v24 }
 0x17f   : > { %2914 = vst.msk [vmem:[%s4527_s11 + $0x1a8] sm:$0xff] %vm2860_vm3, %v2657_v25  ;;  %3042 = vst.msk [vmem:[%s4527_s11 + $0x5a8] sm:$0xff] %vm2860_vm3, %v2785_v26  ;;  %v3693_v27 = vpop.f32.mrb[56].mxu0  ;;  %v3821_v28 = vpop.f32.mrb[56].mxu1 }
 0x180   : > { %v1814_v29 = vadd.f32 %v3693_v27, %v4516_v51  ;;  %v2326_v30 = vadd.f32 %v3821_v28, %v4516_v51  ;;  %v1805_v31 = vpop.f32.mrb[57].mxu0  ;;  %v2317_v32 = vpop.f32.mrb[57].mxu1 }
 0x181   : > { %v1806_v33 = vadd.f32 %v4516_v51, %v1805_v31  ;;  %v2318_v34 = vadd.f32 %v4516_v51, %v2317_v32  ;;  %v3694_v35 = vpop.f32.mrb[58].mxu0  ;;  %v3822_v36 = vpop.f32.mrb[58].mxu1 }
 0x182   : > { %v2662_v37 = vmax.f32 %v1814_v29, 0.0  ;;  %v2790_v38 = vmax.f32 %v2326_v30, 0.0  ;;  %v1817_v39 = vadd.f32 %v3694_v35, %v4516_v51  ;;  %v2329_v40 = vadd.f32 %v3822_v36, %v4516_v51  ;;  %v1808_v41 = vpop.f32.mrb[59].mxu0  ;;  %v2320_v42 = vpop.f32.mrb[59].mxu1 }
 0x183   : > { %v2660_v43 = vmax.f32 %v1806_v33, 0.0  ;;  %v2788_v44 = vmax.f32 %v2318_v34, 0.0  ;;  %v1809_v45 = vadd.f32 %v4516_v51, %v1808_v41  ;;  %v2321_v46 = vadd.f32 %v4516_v51, %v2320_v42 }
 0x184   : > { %2919 = vst.msk [vmem:[%s4527_s11 + $0x1d0] sm:$0xff] %vm2860_vm3, %v2662_v37  ;;  %3047 = vst.msk [vmem:[%s4527_s11 + $0x5d0] sm:$0xff] %vm2860_vm3, %v2790_v38  ;;  %v2663_v47 = vmax.f32 %v1817_v39, 0.0  ;;  %v2791_v48 = vmax.f32 %v2329_v40, 0.0 }
 0x185   : > { %2917 = vst.msk [vmem:[%s4527_s11 + $0x1c0] sm:$0xff] %vm2860_vm3, %v2660_v43  ;;  %3045 = vst.msk [vmem:[%s4527_s11 + $0x5c0] sm:$0xff] %vm2860_vm3, %v2788_v44  ;;  %v2661_v49 = vmax.f32 %v1809_v45, 0.0  ;;  %v2789_v50 = vmax.f32 %v2321_v46, 0.0 }
 0x186   : > { %2920 = vst.msk [vmem:[%s4527_s11 + $0x1d8] sm:$0xff] %vm2860_vm3, %v2663_v47  ;;  %3048 = vst.msk [vmem:[%s4527_s11 + $0x5d8] sm:$0xff] %vm2860_vm3, %v2791_v48 }
 0x187   : > { %2918 = vst.msk [vmem:[%s4527_s11 + $0x1c8] sm:$0xff] %vm2860_vm3, %v2661_v49  ;;  %3046 = vst.msk [vmem:[%s4527_s11 + $0x5c8] sm:$0xff] %vm2860_vm3, %v2789_v50  ;;  %v3697_v51 = vpop.f32.mrb[60].mxu0  ;;  %v3825_v52 = vpop.f32.mrb[60].mxu1 }
 0x188   : > { %v1830_v54 = vadd.f32 %v4924_v53, %v3697_v51  ;;  %v2342_v55 = vadd.f32 %v4924_v53, %v3825_v52  ;;  %v1821_v56 = vpop.f32.mrb[61].mxu0  ;;  %v2333_v57 = vpop.f32.mrb[61].mxu1 }
 0x189   : > { %v1822_v58 = vadd.f32 %v4924_v53, %v1821_v56  ;;  %v2334_v59 = vadd.f32 %v4924_v53, %v2333_v57  ;;  %v3698_v60 = vpop.f32.mrb[62].mxu0  ;;  %v3826_v61 = vpop.f32.mrb[62].mxu1 }
 0x18a   : > { %v2666_v62 = vmax.f32 %v1830_v54, 0.0  ;;  %v2794_v63 = vmax.f32 %v2342_v55, 0.0  ;;  %v1833_v0 = vadd.f32 %v4924_v53, %v3698_v60  ;;  %v2345_v1 = vadd.f32 %v4924_v53, %v3826_v61  ;;  %v1824_v2 = vpop.f32.mrb[63].mxu0  ;;  %v2336_v3 = vpop.f32.mrb[63].mxu1 }
 0x18b   : > { %v2664_v4 = vmax.f32 %v1822_v58, 0.0  ;;  %v2792_v5 = vmax.f32 %v2334_v59, 0.0  ;;  %v1825_v6 = vadd.f32 %v4924_v53, %v1824_v2  ;;  %v2337_v7 = vadd.f32 %v4924_v53, %v2336_v3 }
 0x18c   : > { %2923 = vst.msk [vmem:[%s4527_s11 + $0x1f0] sm:$0xff] %vm2860_vm3, %v2666_v62  ;;  %3051 = vst.msk [vmem:[%s4527_s11 + $0x5f0] sm:$0xff] %vm2860_vm3, %v2794_v63  ;;  %v2667_v8 = vmax.f32 %v1833_v0, 0.0  ;;  %v2795_v9 = vmax.f32 %v2345_v1, 0.0 }
 0x18d   : > { %2921 = vst.msk [vmem:[%s4527_s11 + $0x1e0] sm:$0xff] %vm2860_vm3, %v2664_v4  ;;  %3049 = vst.msk [vmem:[%s4527_s11 + $0x5e0] sm:$0xff] %vm2860_vm3, %v2792_v5  ;;  %v2665_v10 = vmax.f32 %v1825_v6, 0.0  ;;  %v2793_v11 = vmax.f32 %v2337_v7, 0.0 }
 0x18e   : > { %2924 = vst.msk [vmem:[%s4527_s11 + $0x1f8] sm:$0xff] %vm2860_vm3, %v2667_v8  ;;  %3052 = vst.msk [vmem:[%s4527_s11 + $0x5f8] sm:$0xff] %vm2860_vm3, %v2795_v9 }
 0x18f   : > { %2922 = vst.msk [vmem:[%s4527_s11 + $0x1e8] sm:$0xff] %vm2860_vm3, %v2665_v10  ;;  %3050 = vst.msk [vmem:[%s4527_s11 + $0x5e8] sm:$0xff] %vm2860_vm3, %v2793_v11  ;;  %v3701_v12 = vpop.f32.mrb[64].mxu0  ;;  %v3829_v13 = vpop.f32.mrb[64].mxu1 }
 0x190   : > { %v1846_v14 = vadd.f32 %v4924_v53, %v3701_v12  ;;  %v2358_v15 = vadd.f32 %v4924_v53, %v3829_v13  ;;  %v1837_v16 = vpop.f32.mrb[65].mxu0  ;;  %v2349_v17 = vpop.f32.mrb[65].mxu1 }
 0x191   : > { %v1838_v18 = vadd.f32 %v4924_v53, %v1837_v16  ;;  %v2350_v19 = vadd.f32 %v4924_v53, %v2349_v17  ;;  %v3702_v20 = vpop.f32.mrb[66].mxu0  ;;  %v3830_v21 = vpop.f32.mrb[66].mxu1 }
 0x192   : > { %v2670_v22 = vmax.f32 %v1846_v14, 0.0  ;;  %v2798_v23 = vmax.f32 %v2358_v15, 0.0  ;;  %v1849_v24 = vadd.f32 %v4924_v53, %v3702_v20  ;;  %v2361_v25 = vadd.f32 %v4924_v53, %v3830_v21  ;;  %v1840_v26 = vpop.f32.mrb[67].mxu0  ;;  %v2352_v27 = vpop.f32.mrb[67].mxu1 }
 0x193   : > { %v2668_v28 = vmax.f32 %v1838_v18, 0.0  ;;  %v2796_v29 = vmax.f32 %v2350_v19, 0.0  ;;  %v1841_v30 = vadd.f32 %v4924_v53, %v1840_v26  ;;  %v2353_v31 = vadd.f32 %v4924_v53, %v2352_v27 }
 0x194   : > { %2927 = vst.msk [vmem:[%s4527_s11 + $0x210] sm:$0xff] %vm2860_vm3, %v2670_v22  ;;  %3055 = vst.msk [vmem:[%s4527_s11 + $0x610] sm:$0xff] %vm2860_vm3, %v2798_v23  ;;  %v2671_v32 = vmax.f32 %v1849_v24, 0.0  ;;  %v2799_v33 = vmax.f32 %v2361_v25, 0.0 }
 0x195   : > { %2925 = vst.msk [vmem:[%s4527_s11 + $0x200] sm:$0xff] %vm2860_vm3, %v2668_v28  ;;  %3053 = vst.msk [vmem:[%s4527_s11 + $0x600] sm:$0xff] %vm2860_vm3, %v2796_v29  ;;  %v2669_v34 = vmax.f32 %v1841_v30, 0.0  ;;  %v2797_v35 = vmax.f32 %v2353_v31, 0.0 }
 0x196   : > { %2928 = vst.msk [vmem:[%s4527_s11 + $0x218] sm:$0xff] %vm2860_vm3, %v2671_v32  ;;  %3056 = vst.msk [vmem:[%s4527_s11 + $0x618] sm:$0xff] %vm2860_vm3, %v2799_v33 }
 0x197   : > { %2926 = vst.msk [vmem:[%s4527_s11 + $0x208] sm:$0xff] %vm2860_vm3, %v2669_v34  ;;  %3054 = vst.msk [vmem:[%s4527_s11 + $0x608] sm:$0xff] %vm2860_vm3, %v2797_v35  ;;  %v3705_v36 = vpop.f32.mrb[68].mxu0  ;;  %v3833_v37 = vpop.f32.mrb[68].mxu1 }
 0x198   : > { %v1862_v38 = vadd.f32 %v4924_v53, %v3705_v36  ;;  %v2374_v39 = vadd.f32 %v4924_v53, %v3833_v37  ;;  %v1853_v40 = vpop.f32.mrb[69].mxu0  ;;  %v2365_v41 = vpop.f32.mrb[69].mxu1 }
 0x199   : > { %v1854_v42 = vadd.f32 %v4924_v53, %v1853_v40  ;;  %v2366_v43 = vadd.f32 %v4924_v53, %v2365_v41  ;;  %v3706_v44 = vpop.f32.mrb[70].mxu0  ;;  %v3834_v45 = vpop.f32.mrb[70].mxu1 }
 0x19a   : > { %v2674_v46 = vmax.f32 %v1862_v38, 0.0  ;;  %v2802_v47 = vmax.f32 %v2374_v39, 0.0  ;;  %v1865_v48 = vadd.f32 %v4924_v53, %v3706_v44  ;;  %v2377_v49 = vadd.f32 %v4924_v53, %v3834_v45  ;;  %v1856_v50 = vpop.f32.mrb[71].mxu0  ;;  %v2368_v51 = vpop.f32.mrb[71].mxu1 }
 0x19b   : > { %v2672_v52 = vmax.f32 %v1854_v42, 0.0  ;;  %v2800_v54 = vmax.f32 %v2366_v43, 0.0  ;;  %v1857_v55 = vadd.f32 %v4924_v53, %v1856_v50  ;;  %v2369_v56 = vadd.f32 %v4924_v53, %v2368_v51 }
 0x19c   : > { %2931 = vst.msk [vmem:[%s4527_s11 + $0x230] sm:$0xff] %vm2860_vm3, %v2674_v46  ;;  %3059 = vst.msk [vmem:[%s4527_s11 + $0x630] sm:$0xff] %vm2860_vm3, %v2802_v47  ;;  %v2675_v57 = vmax.f32 %v1865_v48, 0.0  ;;  %v2803_v58 = vmax.f32 %v2377_v49, 0.0 }
 0x19d   : > { %2929 = vst.msk [vmem:[%s4527_s11 + $0x220] sm:$0xff] %vm2860_vm3, %v2672_v52  ;;  %3057 = vst.msk [vmem:[%s4527_s11 + $0x620] sm:$0xff] %vm2860_vm3, %v2800_v54  ;;  %v2673_v59 = vmax.f32 %v1857_v55, 0.0  ;;  %v2801_v60 = vmax.f32 %v2369_v56, 0.0 }
 0x19e   : > { %2932 = vst.msk [vmem:[%s4527_s11 + $0x238] sm:$0xff] %vm2860_vm3, %v2675_v57  ;;  %3060 = vst.msk [vmem:[%s4527_s11 + $0x638] sm:$0xff] %vm2860_vm3, %v2803_v58 }
 0x19f   : > { %2930 = vst.msk [vmem:[%s4527_s11 + $0x228] sm:$0xff] %vm2860_vm3, %v2673_v59  ;;  %3058 = vst.msk [vmem:[%s4527_s11 + $0x628] sm:$0xff] %vm2860_vm3, %v2801_v60  ;;  %v3709_v61 = vpop.f32.mrb[72].mxu0  ;;  %v3837_v62 = vpop.f32.mrb[72].mxu1 }
 0x1a0   : > { %v1878_v63 = vadd.f32 %v4924_v53, %v3709_v61  ;;  %v2390_v0 = vadd.f32 %v4924_v53, %v3837_v62  ;;  %v1869_v1 = vpop.f32.mrb[73].mxu0  ;;  %v2381_v2 = vpop.f32.mrb[73].mxu1 }
 0x1a1   : > { %v1870_v3 = vadd.f32 %v4924_v53, %v1869_v1  ;;  %v2382_v4 = vadd.f32 %v4924_v53, %v2381_v2  ;;  %v3710_v5 = vpop.f32.mrb[74].mxu0  ;;  %v3838_v6 = vpop.f32.mrb[74].mxu1 }
 0x1a2   : > { %v2678_v7 = vmax.f32 %v1878_v63, 0.0  ;;  %v2806_v8 = vmax.f32 %v2390_v0, 0.0  ;;  %v1881_v9 = vadd.f32 %v4924_v53, %v3710_v5  ;;  %v2393_v10 = vadd.f32 %v4924_v53, %v3838_v6  ;;  %v1872_v11 = vpop.f32.mrb[75].mxu0  ;;  %v2384_v12 = vpop.f32.mrb[75].mxu1 }
 0x1a3   : > { %v2676_v13 = vmax.f32 %v1870_v3, 0.0  ;;  %v2804_v14 = vmax.f32 %v2382_v4, 0.0  ;;  %v1873_v15 = vadd.f32 %v4924_v53, %v1872_v11  ;;  %v2385_v16 = vadd.f32 %v4924_v53, %v2384_v12 }
 0x1a4   : > { %2935 = vst.msk [vmem:[%s4527_s11 + $0x250] sm:$0xff] %vm2860_vm3, %v2678_v7  ;;  %3063 = vst.msk [vmem:[%s4527_s11 + $0x650] sm:$0xff] %vm2860_vm3, %v2806_v8  ;;  %v2679_v17 = vmax.f32 %v1881_v9, 0.0  ;;  %v2807_v18 = vmax.f32 %v2393_v10, 0.0 }
 0x1a5   : > { %2933 = vst.msk [vmem:[%s4527_s11 + $0x240] sm:$0xff] %vm2860_vm3, %v2676_v13  ;;  %3061 = vst.msk [vmem:[%s4527_s11 + $0x640] sm:$0xff] %vm2860_vm3, %v2804_v14  ;;  %v2677_v19 = vmax.f32 %v1873_v15, 0.0  ;;  %v2805_v20 = vmax.f32 %v2385_v16, 0.0 }
 0x1a6   : > { %2936 = vst.msk [vmem:[%s4527_s11 + $0x258] sm:$0xff] %vm2860_vm3, %v2679_v17  ;;  %3064 = vst.msk [vmem:[%s4527_s11 + $0x658] sm:$0xff] %vm2860_vm3, %v2807_v18 }
 0x1a7   : > { %2934 = vst.msk [vmem:[%s4527_s11 + $0x248] sm:$0xff] %vm2860_vm3, %v2677_v19  ;;  %3062 = vst.msk [vmem:[%s4527_s11 + $0x648] sm:$0xff] %vm2860_vm3, %v2805_v20  ;;  %v3713_v21 = vpop.f32.mrb[76].mxu0  ;;  %v3841_v22 = vpop.f32.mrb[76].mxu1 }
 0x1a8   : > { %v1894_v23 = vadd.f32 %v4924_v53, %v3713_v21  ;;  %v2406_v24 = vadd.f32 %v4924_v53, %v3841_v22  ;;  %v1885_v25 = vpop.f32.mrb[77].mxu0  ;;  %v2397_v26 = vpop.f32.mrb[77].mxu1 }
 0x1a9   : > { %v1886_v27 = vadd.f32 %v4924_v53, %v1885_v25  ;;  %v2398_v28 = vadd.f32 %v4924_v53, %v2397_v26  ;;  %v3714_v29 = vpop.f32.mrb[78].mxu0  ;;  %v3842_v30 = vpop.f32.mrb[78].mxu1 }
 0x1aa   : > { %v2682_v31 = vmax.f32 %v1894_v23, 0.0  ;;  %v2810_v32 = vmax.f32 %v2406_v24, 0.0  ;;  %v1897_v33 = vadd.f32 %v4924_v53, %v3714_v29  ;;  %v2409_v34 = vadd.f32 %v4924_v53, %v3842_v30  ;;  %v1888_v35 = vpop.f32.mrb[79].mxu0  ;;  %v2400_v36 = vpop.f32.mrb[79].mxu1 }
 0x1ab   : > { %v2680_v37 = vmax.f32 %v1886_v27, 0.0  ;;  %v2808_v38 = vmax.f32 %v2398_v28, 0.0  ;;  %v1889_v39 = vadd.f32 %v4924_v53, %v1888_v35  ;;  %v2401_v40 = vadd.f32 %v4924_v53, %v2400_v36 }
 0x1ac   : > { %2939 = vst.msk [vmem:[%s4527_s11 + $0x270] sm:$0xff] %vm2860_vm3, %v2682_v31  ;;  %3067 = vst.msk [vmem:[%s4527_s11 + $0x670] sm:$0xff] %vm2860_vm3, %v2810_v32  ;;  %v2683_v41 = vmax.f32 %v1897_v33, 0.0  ;;  %v2811_v42 = vmax.f32 %v2409_v34, 0.0 }
 0x1ad   : > { %2937 = vst.msk [vmem:[%s4527_s11 + $0x260] sm:$0xff] %vm2860_vm3, %v2680_v37  ;;  %3065 = vst.msk [vmem:[%s4527_s11 + $0x660] sm:$0xff] %vm2860_vm3, %v2808_v38  ;;  %v2681_v43 = vmax.f32 %v1889_v39, 0.0  ;;  %v2809_v44 = vmax.f32 %v2401_v40, 0.0 }
 0x1ae   : > { %2940 = vst.msk [vmem:[%s4527_s11 + $0x278] sm:$0xff] %vm2860_vm3, %v2683_v41  ;;  %3068 = vst.msk [vmem:[%s4527_s11 + $0x678] sm:$0xff] %vm2860_vm3, %v2811_v42 }
 0x1af   : > { %2938 = vst.msk [vmem:[%s4527_s11 + $0x268] sm:$0xff] %vm2860_vm3, %v2681_v43  ;;  %3066 = vst.msk [vmem:[%s4527_s11 + $0x668] sm:$0xff] %vm2860_vm3, %v2809_v44  ;;  %v3717_v45 = vpop.f32.mrb[80].mxu0  ;;  %v3845_v46 = vpop.f32.mrb[80].mxu1 }
 0x1b0   : > { %v1910_v47 = vadd.f32 %v4924_v53, %v3717_v45  ;;  %v2422_v48 = vadd.f32 %v4924_v53, %v3845_v46  ;;  %v1901_v49 = vpop.f32.mrb[81].mxu0  ;;  %v2413_v50 = vpop.f32.mrb[81].mxu1 }
 0x1b1   : > { %v1902_v51 = vadd.f32 %v4924_v53, %v1901_v49  ;;  %v2414_v52 = vadd.f32 %v4924_v53, %v2413_v50  ;;  %v3718_v54 = vpop.f32.mrb[82].mxu0  ;;  %v3846_v55 = vpop.f32.mrb[82].mxu1 }
 0x1b2   : > { %v2686_v56 = vmax.f32 %v1910_v47, 0.0  ;;  %v2814_v57 = vmax.f32 %v2422_v48, 0.0  ;;  %v1913_v58 = vadd.f32 %v4924_v53, %v3718_v54  ;;  %v2425_v59 = vadd.f32 %v4924_v53, %v3846_v55  ;;  %v1904_v60 = vpop.f32.mrb[83].mxu0  ;;  %v2416_v61 = vpop.f32.mrb[83].mxu1 }
 0x1b3   : > { %v2684_v62 = vmax.f32 %v1902_v51, 0.0  ;;  %v2812_v63 = vmax.f32 %v2414_v52, 0.0  ;;  %v1905_v0 = vadd.f32 %v4924_v53, %v1904_v60  ;;  %v2417_v1 = vadd.f32 %v4924_v53, %v2416_v61 }
 0x1b4   : > { %2943 = vst.msk [vmem:[%s4527_s11 + $0x290] sm:$0xff] %vm2860_vm3, %v2686_v56  ;;  %3071 = vst.msk [vmem:[%s4527_s11 + $0x690] sm:$0xff] %vm2860_vm3, %v2814_v57  ;;  %v2687_v2 = vmax.f32 %v1913_v58, 0.0  ;;  %v2815_v3 = vmax.f32 %v2425_v59, 0.0 }
 0x1b5   : > { %2941 = vst.msk [vmem:[%s4527_s11 + $0x280] sm:$0xff] %vm2860_vm3, %v2684_v62  ;;  %3069 = vst.msk [vmem:[%s4527_s11 + $0x680] sm:$0xff] %vm2860_vm3, %v2812_v63  ;;  %v2685_v4 = vmax.f32 %v1905_v0, 0.0  ;;  %v2813_v5 = vmax.f32 %v2417_v1, 0.0 }
 0x1b6   : > { %2944 = vst.msk [vmem:[%s4527_s11 + $0x298] sm:$0xff] %vm2860_vm3, %v2687_v2  ;;  %3072 = vst.msk [vmem:[%s4527_s11 + $0x698] sm:$0xff] %vm2860_vm3, %v2815_v3 }
 0x1b7   : > { %2942 = vst.msk [vmem:[%s4527_s11 + $0x288] sm:$0xff] %vm2860_vm3, %v2685_v4  ;;  %3070 = vst.msk [vmem:[%s4527_s11 + $0x688] sm:$0xff] %vm2860_vm3, %v2813_v5  ;;  %v3721_v6 = vpop.f32.mrb[84].mxu0  ;;  %v3849_v7 = vpop.f32.mrb[84].mxu1 }
 0x1b8   : > { %v1926_v8 = vadd.f32 %v4924_v53, %v3721_v6  ;;  %v2438_v9 = vadd.f32 %v4924_v53, %v3849_v7  ;;  %v1917_v10 = vpop.f32.mrb[85].mxu0  ;;  %v2429_v11 = vpop.f32.mrb[85].mxu1 }
 0x1b9   : > { %v1918_v12 = vadd.f32 %v4924_v53, %v1917_v10  ;;  %v2430_v13 = vadd.f32 %v4924_v53, %v2429_v11  ;;  %v3722_v14 = vpop.f32.mrb[86].mxu0  ;;  %v3850_v15 = vpop.f32.mrb[86].mxu1 }
 0x1ba   : > { %v2690_v16 = vmax.f32 %v1926_v8, 0.0  ;;  %v2818_v17 = vmax.f32 %v2438_v9, 0.0  ;;  %v1929_v18 = vadd.f32 %v4924_v53, %v3722_v14  ;;  %v2441_v19 = vadd.f32 %v4924_v53, %v3850_v15  ;;  %v1920_v20 = vpop.f32.mrb[87].mxu0  ;;  %v2432_v21 = vpop.f32.mrb[87].mxu1 }
 0x1bb   : > { %v2688_v22 = vmax.f32 %v1918_v12, 0.0  ;;  %v2816_v23 = vmax.f32 %v2430_v13, 0.0  ;;  %v1921_v24 = vadd.f32 %v4924_v53, %v1920_v20  ;;  %v2433_v25 = vadd.f32 %v4924_v53, %v2432_v21 }
 0x1bc   : > { %2947 = vst.msk [vmem:[%s4527_s11 + $0x2b0] sm:$0xff] %vm2860_vm3, %v2690_v16  ;;  %3075 = vst.msk [vmem:[%s4527_s11 + $0x6b0] sm:$0xff] %vm2860_vm3, %v2818_v17  ;;  %v2691_v26 = vmax.f32 %v1929_v18, 0.0  ;;  %v2819_v27 = vmax.f32 %v2441_v19, 0.0 }
 0x1bd   : > { %2945 = vst.msk [vmem:[%s4527_s11 + $0x2a0] sm:$0xff] %vm2860_vm3, %v2688_v22  ;;  %3073 = vst.msk [vmem:[%s4527_s11 + $0x6a0] sm:$0xff] %vm2860_vm3, %v2816_v23  ;;  %v2689_v28 = vmax.f32 %v1921_v24, 0.0  ;;  %v2817_v29 = vmax.f32 %v2433_v25, 0.0 }
 0x1be   : > { %2948 = vst.msk [vmem:[%s4527_s11 + $0x2b8] sm:$0xff] %vm2860_vm3, %v2691_v26  ;;  %3076 = vst.msk [vmem:[%s4527_s11 + $0x6b8] sm:$0xff] %vm2860_vm3, %v2819_v27 }
 0x1bf   : > { %2946 = vst.msk [vmem:[%s4527_s11 + $0x2a8] sm:$0xff] %vm2860_vm3, %v2689_v28  ;;  %3074 = vst.msk [vmem:[%s4527_s11 + $0x6a8] sm:$0xff] %vm2860_vm3, %v2817_v29  ;;  %v3725_v30 = vpop.f32.mrb[88].mxu0  ;;  %v3853_v31 = vpop.f32.mrb[88].mxu1 }
 0x1c0   : > { %v1942_v32 = vadd.f32 %v4924_v53, %v3725_v30  ;;  %v2454_v33 = vadd.f32 %v4924_v53, %v3853_v31  ;;  %v1933_v34 = vpop.f32.mrb[89].mxu0  ;;  %v2445_v35 = vpop.f32.mrb[89].mxu1 }
 0x1c1   : > { %v1934_v36 = vadd.f32 %v4924_v53, %v1933_v34  ;;  %v2446_v37 = vadd.f32 %v4924_v53, %v2445_v35  ;;  %v3726_v38 = vpop.f32.mrb[90].mxu0  ;;  %v3854_v39 = vpop.f32.mrb[90].mxu1 }
 0x1c2   : > { %v2694_v40 = vmax.f32 %v1942_v32, 0.0  ;;  %v2822_v41 = vmax.f32 %v2454_v33, 0.0  ;;  %v1945_v42 = vadd.f32 %v4924_v53, %v3726_v38  ;;  %v2457_v43 = vadd.f32 %v4924_v53, %v3854_v39  ;;  %v1936_v44 = vpop.f32.mrb[91].mxu0  ;;  %v2448_v45 = vpop.f32.mrb[91].mxu1 }
 0x1c3   : > { %v2692_v46 = vmax.f32 %v1934_v36, 0.0  ;;  %v2820_v47 = vmax.f32 %v2446_v37, 0.0  ;;  %v1937_v48 = vadd.f32 %v4924_v53, %v1936_v44  ;;  %v2449_v49 = vadd.f32 %v4924_v53, %v2448_v45 }
 0x1c4   : > { %2951 = vst.msk [vmem:[%s4527_s11 + $0x2d0] sm:$0xff] %vm2860_vm3, %v2694_v40  ;;  %3079 = vst.msk [vmem:[%s4527_s11 + $0x6d0] sm:$0xff] %vm2860_vm3, %v2822_v41  ;;  %v2695_v50 = vmax.f32 %v1945_v42, 0.0  ;;  %v2823_v51 = vmax.f32 %v2457_v43, 0.0 }
 0x1c5   : > { %2949 = vst.msk [vmem:[%s4527_s11 + $0x2c0] sm:$0xff] %vm2860_vm3, %v2692_v46  ;;  %3077 = vst.msk [vmem:[%s4527_s11 + $0x6c0] sm:$0xff] %vm2860_vm3, %v2820_v47  ;;  %v2693_v52 = vmax.f32 %v1937_v48, 0.0  ;;  %v2821_v54 = vmax.f32 %v2449_v49, 0.0 }
 0x1c6   : > { %2952 = vst.msk [vmem:[%s4527_s11 + $0x2d8] sm:$0xff] %vm2860_vm3, %v2695_v50  ;;  %3080 = vst.msk [vmem:[%s4527_s11 + $0x6d8] sm:$0xff] %vm2860_vm3, %v2823_v51 }
 0x1c7   : > { %2950 = vst.msk [vmem:[%s4527_s11 + $0x2c8] sm:$0xff] %vm2860_vm3, %v2693_v52  ;;  %3078 = vst.msk [vmem:[%s4527_s11 + $0x6c8] sm:$0xff] %vm2860_vm3, %v2821_v54  ;;  %v3729_v55 = vpop.f32.mrb[92].mxu0  ;;  %v3857_v56 = vpop.f32.mrb[92].mxu1 }
 0x1c8   : > { %v1958_v57 = vadd.f32 %v4924_v53, %v3729_v55  ;;  %v2470_v58 = vadd.f32 %v4924_v53, %v3857_v56  ;;  %v1949_v59 = vpop.f32.mrb[93].mxu0  ;;  %v2461_v60 = vpop.f32.mrb[93].mxu1 }
 0x1c9   : > { %v1950_v61 = vadd.f32 %v4924_v53, %v1949_v59  ;;  %v2462_v62 = vadd.f32 %v4924_v53, %v2461_v60  ;;  %v3730_v63 = vpop.f32.mrb[94].mxu0  ;;  %v3858_v0 = vpop.f32.mrb[94].mxu1 }
 0x1ca   : > { %v2698_v1 = vmax.f32 %v1958_v57, 0.0  ;;  %v2826_v2 = vmax.f32 %v2470_v58, 0.0  ;;  %v1961_v3 = vadd.f32 %v4924_v53, %v3730_v63  ;;  %v2473_v4 = vadd.f32 %v4924_v53, %v3858_v0  ;;  %v1952_v5 = vpop.f32.mrb[95].mxu0  ;;  %v2464_v6 = vpop.f32.mrb[95].mxu1 }
 0x1cb   : > { %v2696_v7 = vmax.f32 %v1950_v61, 0.0  ;;  %v2824_v8 = vmax.f32 %v2462_v62, 0.0  ;;  %v1953_v9 = vadd.f32 %v4924_v53, %v1952_v5  ;;  %v2465_v10 = vadd.f32 %v4924_v53, %v2464_v6 }
 0x1cc   : > { %2955 = vst.msk [vmem:[%s4527_s11 + $0x2f0] sm:$0xff] %vm2860_vm3, %v2698_v1  ;;  %3083 = vst.msk [vmem:[%s4527_s11 + $0x6f0] sm:$0xff] %vm2860_vm3, %v2826_v2  ;;  %v2699_v11 = vmax.f32 %v1961_v3, 0.0  ;;  %v2827_v12 = vmax.f32 %v2473_v4, 0.0 }
 0x1cd   : > { %2953 = vst.msk [vmem:[%s4527_s11 + $0x2e0] sm:$0xff] %vm2860_vm3, %v2696_v7  ;;  %3081 = vst.msk [vmem:[%s4527_s11 + $0x6e0] sm:$0xff] %vm2860_vm3, %v2824_v8  ;;  %v2697_v13 = vmax.f32 %v1953_v9, 0.0  ;;  %v2825_v14 = vmax.f32 %v2465_v10, 0.0 }
 0x1ce   : > { %2956 = vst.msk [vmem:[%s4527_s11 + $0x2f8] sm:$0xff] %vm2860_vm3, %v2699_v11  ;;  %3084 = vst.msk [vmem:[%s4527_s11 + $0x6f8] sm:$0xff] %vm2860_vm3, %v2827_v12 }
 0x1cf   : > { %2954 = vst.msk [vmem:[%s4527_s11 + $0x2e8] sm:$0xff] %vm2860_vm3, %v2697_v13  ;;  %3082 = vst.msk [vmem:[%s4527_s11 + $0x6e8] sm:$0xff] %vm2860_vm3, %v2825_v14  ;;  %v3733_v15 = vpop.f32.mrb[96].mxu0  ;;  %v3861_v16 = vpop.f32.mrb[96].mxu1 }
 0x1d0   : > { %v1974_v17 = vadd.f32 %v4924_v53, %v3733_v15  ;;  %v2486_v18 = vadd.f32 %v4924_v53, %v3861_v16  ;;  %v1965_v19 = vpop.f32.mrb[97].mxu0  ;;  %v2477_v20 = vpop.f32.mrb[97].mxu1 }
 0x1d1   : > { %v1966_v21 = vadd.f32 %v4924_v53, %v1965_v19  ;;  %v2478_v22 = vadd.f32 %v4924_v53, %v2477_v20  ;;  %v3734_v23 = vpop.f32.mrb[98].mxu0  ;;  %v3862_v24 = vpop.f32.mrb[98].mxu1 }
 0x1d2   : > { %v2702_v25 = vmax.f32 %v1974_v17, 0.0  ;;  %v2830_v26 = vmax.f32 %v2486_v18, 0.0  ;;  %v1977_v27 = vadd.f32 %v4924_v53, %v3734_v23  ;;  %v2489_v28 = vadd.f32 %v4924_v53, %v3862_v24  ;;  %v1968_v29 = vpop.f32.mrb[99].mxu0  ;;  %v2480_v30 = vpop.f32.mrb[99].mxu1 }
 0x1d3   : > { %v2700_v31 = vmax.f32 %v1966_v21, 0.0  ;;  %v2828_v32 = vmax.f32 %v2478_v22, 0.0  ;;  %v1969_v33 = vadd.f32 %v4924_v53, %v1968_v29  ;;  %v2481_v34 = vadd.f32 %v4924_v53, %v2480_v30 }
 0x1d4   : > { %2959 = vst.msk [vmem:[%s4527_s11 + $0x310] sm:$0xff] %vm2860_vm3, %v2702_v25  ;;  %3087 = vst.msk [vmem:[%s4527_s11 + $0x710] sm:$0xff] %vm2860_vm3, %v2830_v26  ;;  %v2703_v35 = vmax.f32 %v1977_v27, 0.0  ;;  %v2831_v36 = vmax.f32 %v2489_v28, 0.0 }
 0x1d5   : > { %2957 = vst.msk [vmem:[%s4527_s11 + $0x300] sm:$0xff] %vm2860_vm3, %v2700_v31  ;;  %3085 = vst.msk [vmem:[%s4527_s11 + $0x700] sm:$0xff] %vm2860_vm3, %v2828_v32  ;;  %v2701_v37 = vmax.f32 %v1969_v33, 0.0  ;;  %v2829_v38 = vmax.f32 %v2481_v34, 0.0 }
 0x1d6   : > { %2960 = vst.msk [vmem:[%s4527_s11 + $0x318] sm:$0xff] %vm2860_vm3, %v2703_v35  ;;  %3088 = vst.msk [vmem:[%s4527_s11 + $0x718] sm:$0xff] %vm2860_vm3, %v2831_v36 }
 0x1d7   : > { %2958 = vst.msk [vmem:[%s4527_s11 + $0x308] sm:$0xff] %vm2860_vm3, %v2701_v37  ;;  %3086 = vst.msk [vmem:[%s4527_s11 + $0x708] sm:$0xff] %vm2860_vm3, %v2829_v38  ;;  %v3737_v39 = vpop.f32.mrb[100].mxu0  ;;  %v3865_v40 = vpop.f32.mrb[100].mxu1 }
 0x1d8   : > { %v1990_v41 = vadd.f32 %v4924_v53, %v3737_v39  ;;  %v2502_v42 = vadd.f32 %v4924_v53, %v3865_v40  ;;  %v1981_v43 = vpop.f32.mrb[101].mxu0  ;;  %v2493_v44 = vpop.f32.mrb[101].mxu1 }
 0x1d9   : > { %v1982_v45 = vadd.f32 %v4924_v53, %v1981_v43  ;;  %v2494_v46 = vadd.f32 %v4924_v53, %v2493_v44  ;;  %v3738_v47 = vpop.f32.mrb[102].mxu0  ;;  %v3866_v48 = vpop.f32.mrb[102].mxu1 }
 0x1da   : > { %v2706_v49 = vmax.f32 %v1990_v41, 0.0  ;;  %v2834_v50 = vmax.f32 %v2502_v42, 0.0  ;;  %v1993_v51 = vadd.f32 %v4924_v53, %v3738_v47  ;;  %v2505_v52 = vadd.f32 %v4924_v53, %v3866_v48  ;;  %v1984_v54 = vpop.f32.mrb[103].mxu0  ;;  %v2496_v55 = vpop.f32.mrb[103].mxu1 }
 0x1db   : > { %v2704_v56 = vmax.f32 %v1982_v45, 0.0  ;;  %v2832_v57 = vmax.f32 %v2494_v46, 0.0  ;;  %v1985_v58 = vadd.f32 %v4924_v53, %v1984_v54  ;;  %v2497_v59 = vadd.f32 %v4924_v53, %v2496_v55 }
 0x1dc   : > { %2963 = vst.msk [vmem:[%s4527_s11 + $0x330] sm:$0xff] %vm2860_vm3, %v2706_v49  ;;  %3091 = vst.msk [vmem:[%s4527_s11 + $0x730] sm:$0xff] %vm2860_vm3, %v2834_v50  ;;  %v2707_v60 = vmax.f32 %v1993_v51, 0.0  ;;  %v2835_v61 = vmax.f32 %v2505_v52, 0.0 }
 0x1dd   : > { %2961 = vst.msk [vmem:[%s4527_s11 + $0x320] sm:$0xff] %vm2860_vm3, %v2704_v56  ;;  %3089 = vst.msk [vmem:[%s4527_s11 + $0x720] sm:$0xff] %vm2860_vm3, %v2832_v57  ;;  %v2705_v62 = vmax.f32 %v1985_v58, 0.0  ;;  %v2833_v63 = vmax.f32 %v2497_v59, 0.0 }
 0x1de   : > { %2964 = vst.msk [vmem:[%s4527_s11 + $0x338] sm:$0xff] %vm2860_vm3, %v2707_v60  ;;  %3092 = vst.msk [vmem:[%s4527_s11 + $0x738] sm:$0xff] %vm2860_vm3, %v2835_v61 }
 0x1df   : > { %2962 = vst.msk [vmem:[%s4527_s11 + $0x328] sm:$0xff] %vm2860_vm3, %v2705_v62  ;;  %3090 = vst.msk [vmem:[%s4527_s11 + $0x728] sm:$0xff] %vm2860_vm3, %v2833_v63  ;;  %v3741_v0 = vpop.f32.mrb[104].mxu0  ;;  %v3869_v1 = vpop.f32.mrb[104].mxu1 }
 0x1e0   : > { %v2006_v2 = vadd.f32 %v4924_v53, %v3741_v0  ;;  %v2518_v3 = vadd.f32 %v4924_v53, %v3869_v1  ;;  %v1997_v4 = vpop.f32.mrb[105].mxu0  ;;  %v2509_v5 = vpop.f32.mrb[105].mxu1 }
 0x1e1   : > { %v1998_v6 = vadd.f32 %v4924_v53, %v1997_v4  ;;  %v2510_v7 = vadd.f32 %v4924_v53, %v2509_v5  ;;  %v3742_v8 = vpop.f32.mrb[106].mxu0  ;;  %v3870_v9 = vpop.f32.mrb[106].mxu1 }
 0x1e2   : > { %v2710_v10 = vmax.f32 %v2006_v2, 0.0  ;;  %v2838_v11 = vmax.f32 %v2518_v3, 0.0  ;;  %v2009_v12 = vadd.f32 %v4924_v53, %v3742_v8  ;;  %v2521_v13 = vadd.f32 %v4924_v53, %v3870_v9  ;;  %v2000_v14 = vpop.f32.mrb[107].mxu0  ;;  %v2512_v15 = vpop.f32.mrb[107].mxu1 }
 0x1e3   : > { %v2708_v16 = vmax.f32 %v1998_v6, 0.0  ;;  %v2836_v17 = vmax.f32 %v2510_v7, 0.0  ;;  %v2001_v18 = vadd.f32 %v4924_v53, %v2000_v14  ;;  %v2513_v19 = vadd.f32 %v4924_v53, %v2512_v15 }
 0x1e4   : > { %2967 = vst.msk [vmem:[%s4527_s11 + $0x350] sm:$0xff] %vm2860_vm3, %v2710_v10  ;;  %3095 = vst.msk [vmem:[%s4527_s11 + $0x750] sm:$0xff] %vm2860_vm3, %v2838_v11  ;;  %v2711_v20 = vmax.f32 %v2009_v12, 0.0  ;;  %v2839_v21 = vmax.f32 %v2521_v13, 0.0 }
 0x1e5   : > { %2965 = vst.msk [vmem:[%s4527_s11 + $0x340] sm:$0xff] %vm2860_vm3, %v2708_v16  ;;  %3093 = vst.msk [vmem:[%s4527_s11 + $0x740] sm:$0xff] %vm2860_vm3, %v2836_v17  ;;  %v2709_v22 = vmax.f32 %v2001_v18, 0.0  ;;  %v2837_v23 = vmax.f32 %v2513_v19, 0.0 }
 0x1e6   : > { %2968 = vst.msk [vmem:[%s4527_s11 + $0x358] sm:$0xff] %vm2860_vm3, %v2711_v20  ;;  %3096 = vst.msk [vmem:[%s4527_s11 + $0x758] sm:$0xff] %vm2860_vm3, %v2839_v21 }
 0x1e7   : > { %2966 = vst.msk [vmem:[%s4527_s11 + $0x348] sm:$0xff] %vm2860_vm3, %v2709_v22  ;;  %3094 = vst.msk [vmem:[%s4527_s11 + $0x748] sm:$0xff] %vm2860_vm3, %v2837_v23  ;;  %v3745_v24 = vpop.f32.mrb[108].mxu0  ;;  %v3873_v25 = vpop.f32.mrb[108].mxu1 }
 0x1e8   : > { %v2022_v26 = vadd.f32 %v4924_v53, %v3745_v24  ;;  %v2534_v27 = vadd.f32 %v4924_v53, %v3873_v25  ;;  %v2013_v28 = vpop.f32.mrb[109].mxu0  ;;  %v2525_v29 = vpop.f32.mrb[109].mxu1 }
 0x1e9   : > { %v2014_v30 = vadd.f32 %v4924_v53, %v2013_v28  ;;  %v2526_v31 = vadd.f32 %v4924_v53, %v2525_v29  ;;  %v3746_v32 = vpop.f32.mrb[110].mxu0  ;;  %v3874_v33 = vpop.f32.mrb[110].mxu1 }
 0x1ea   : > { %v2714_v34 = vmax.f32 %v2022_v26, 0.0  ;;  %v2842_v35 = vmax.f32 %v2534_v27, 0.0  ;;  %v2025_v36 = vadd.f32 %v4924_v53, %v3746_v32  ;;  %v2537_v37 = vadd.f32 %v4924_v53, %v3874_v33  ;;  %v2016_v38 = vpop.f32.mrb[111].mxu0  ;;  %v2528_v39 = vpop.f32.mrb[111].mxu1 }
 0x1eb   : > { %v2712_v40 = vmax.f32 %v2014_v30, 0.0  ;;  %v2840_v41 = vmax.f32 %v2526_v31, 0.0  ;;  %v2017_v42 = vadd.f32 %v4924_v53, %v2016_v38  ;;  %v2529_v43 = vadd.f32 %v4924_v53, %v2528_v39 }
 0x1ec   : > { %2971 = vst.msk [vmem:[%s4527_s11 + $0x370] sm:$0xff] %vm2860_vm3, %v2714_v34  ;;  %3099 = vst.msk [vmem:[%s4527_s11 + $0x770] sm:$0xff] %vm2860_vm3, %v2842_v35  ;;  %v2715_v44 = vmax.f32 %v2025_v36, 0.0  ;;  %v2843_v45 = vmax.f32 %v2537_v37, 0.0 }
 0x1ed   : > { %2969 = vst.msk [vmem:[%s4527_s11 + $0x360] sm:$0xff] %vm2860_vm3, %v2712_v40  ;;  %3097 = vst.msk [vmem:[%s4527_s11 + $0x760] sm:$0xff] %vm2860_vm3, %v2840_v41  ;;  %v2713_v46 = vmax.f32 %v2017_v42, 0.0  ;;  %v2841_v47 = vmax.f32 %v2529_v43, 0.0 }
 0x1ee   : > { %2972 = vst.msk [vmem:[%s4527_s11 + $0x378] sm:$0xff] %vm2860_vm3, %v2715_v44  ;;  %3100 = vst.msk [vmem:[%s4527_s11 + $0x778] sm:$0xff] %vm2860_vm3, %v2843_v45 }
 0x1ef   : > { %2970 = vst.msk [vmem:[%s4527_s11 + $0x368] sm:$0xff] %vm2860_vm3, %v2713_v46  ;;  %3098 = vst.msk [vmem:[%s4527_s11 + $0x768] sm:$0xff] %vm2860_vm3, %v2841_v47  ;;  %v3749_v48 = vpop.f32.mrb[112].mxu0  ;;  %v3877_v49 = vpop.f32.mrb[112].mxu1 }
 0x1f0   : > { %v2038_v50 = vadd.f32 %v4924_v53, %v3749_v48  ;;  %v2550_v51 = vadd.f32 %v4924_v53, %v3877_v49  ;;  %v2029_v52 = vpop.f32.mrb[113].mxu0  ;;  %v2541_v54 = vpop.f32.mrb[113].mxu1 }
 0x1f1   : > { %v2030_v55 = vadd.f32 %v4924_v53, %v2029_v52  ;;  %v2542_v56 = vadd.f32 %v4924_v53, %v2541_v54  ;;  %v3750_v57 = vpop.f32.mrb[114].mxu0  ;;  %v3878_v58 = vpop.f32.mrb[114].mxu1 }
 0x1f2   : > { %v2718_v59 = vmax.f32 %v2038_v50, 0.0  ;;  %v2846_v60 = vmax.f32 %v2550_v51, 0.0  ;;  %v2041_v61 = vadd.f32 %v4924_v53, %v3750_v57  ;;  %v2553_v62 = vadd.f32 %v4924_v53, %v3878_v58  ;;  %v2032_v63 = vpop.f32.mrb[115].mxu0  ;;  %v2544_v0 = vpop.f32.mrb[115].mxu1 }
 0x1f3   : > { %v2716_v1 = vmax.f32 %v2030_v55, 0.0  ;;  %v2844_v2 = vmax.f32 %v2542_v56, 0.0  ;;  %v2033_v3 = vadd.f32 %v4924_v53, %v2032_v63  ;;  %v2545_v4 = vadd.f32 %v4924_v53, %v2544_v0 }
 0x1f4   : > { %2975 = vst.msk [vmem:[%s4527_s11 + $0x390] sm:$0xff] %vm2860_vm3, %v2718_v59  ;;  %3103 = vst.msk [vmem:[%s4527_s11 + $0x790] sm:$0xff] %vm2860_vm3, %v2846_v60  ;;  %v2719_v5 = vmax.f32 %v2041_v61, 0.0  ;;  %v2847_v6 = vmax.f32 %v2553_v62, 0.0  ;;  %v4081_v59 = vld [vmem:[%s5349_s2] ss:$0 sm:$0xff] }
 0x1f5   : > { %2973 = vst.msk [vmem:[%s4527_s11 + $0x380] sm:$0xff] %vm2860_vm3, %v2716_v1  ;;  %3101 = vst.msk [vmem:[%s4527_s11 + $0x780] sm:$0xff] %vm2860_vm3, %v2844_v2  ;;  %v2717_v7 = vmax.f32 %v2033_v3, 0.0  ;;  %v2845_v8 = vmax.f32 %v2545_v4, 0.0 }
 0x1f6   : > { %2976 = vst.msk [vmem:[%s4527_s11 + $0x398] sm:$0xff] %vm2860_vm3, %v2719_v5  ;;  %3104 = vst.msk [vmem:[%s4527_s11 + $0x798] sm:$0xff] %vm2860_vm3, %v2847_v6 }
 0x1f7   : > { %2974 = vst.msk [vmem:[%s4527_s11 + $0x388] sm:$0xff] %vm2860_vm3, %v2717_v7  ;;  %3102 = vst.msk [vmem:[%s4527_s11 + $0x788] sm:$0xff] %vm2860_vm3, %v2845_v8  ;;  %v3753_v9 = vpop.f32.mrb[116].mxu0  ;;  %v3881_v10 = vpop.f32.mrb[116].mxu1 }
 0x1f8   : > { %v2054_v11 = vadd.f32 %v4924_v53, %v3753_v9  ;;  %v2566_v12 = vadd.f32 %v4924_v53, %v3881_v10  ;;  %v2045_v13 = vpop.f32.mrb[117].mxu0  ;;  %v2557_v14 = vpop.f32.mrb[117].mxu1 }
 0x1f9   : > { %v2046_v15 = vadd.f32 %v4924_v53, %v2045_v13  ;;  %v2558_v16 = vadd.f32 %v4924_v53, %v2557_v14  ;;  %v3754_v17 = vpop.f32.mrb[118].mxu0  ;;  %v3882_v18 = vpop.f32.mrb[118].mxu1 }
 0x1fa   : > { %v2722_v19 = vmax.f32 %v2054_v11, 0.0  ;;  %v2850_v20 = vmax.f32 %v2566_v12, 0.0  ;;  %v2057_v21 = vadd.f32 %v4924_v53, %v3754_v17  ;;  %v2569_v22 = vadd.f32 %v4924_v53, %v3882_v18  ;;  %v2048_v23 = vpop.f32.mrb[119].mxu0  ;;  %v2560_v24 = vpop.f32.mrb[119].mxu1 }
 0x1fb   : > { %v2720_v25 = vmax.f32 %v2046_v15, 0.0  ;;  %v2848_v26 = vmax.f32 %v2558_v16, 0.0  ;;  %v2049_v27 = vadd.f32 %v4924_v53, %v2048_v23  ;;  %v2561_v28 = vadd.f32 %v4924_v53, %v2560_v24 }
 0x1fc   : > { %2979 = vst.msk [vmem:[%s4527_s11 + $0x3b0] sm:$0xff] %vm2860_vm3, %v2722_v19  ;;  %3107 = vst.msk [vmem:[%s4527_s11 + $0x7b0] sm:$0xff] %vm2860_vm3, %v2850_v20  ;;  %v2723_v29 = vmax.f32 %v2057_v21, 0.0  ;;  %v2851_v30 = vmax.f32 %v2569_v22, 0.0 }
 0x1fd   : > { %2977 = vst.msk [vmem:[%s4527_s11 + $0x3a0] sm:$0xff] %vm2860_vm3, %v2720_v25  ;;  %3105 = vst.msk [vmem:[%s4527_s11 + $0x7a0] sm:$0xff] %vm2860_vm3, %v2848_v26  ;;  %v2721_v31 = vmax.f32 %v2049_v27, 0.0  ;;  %v2849_v32 = vmax.f32 %v2561_v28, 0.0 }
 0x1fe   : > { %2980 = vst.msk [vmem:[%s4527_s11 + $0x3b8] sm:$0xff] %vm2860_vm3, %v2723_v29  ;;  %3108 = vst.msk [vmem:[%s4527_s11 + $0x7b8] sm:$0xff] %vm2860_vm3, %v2851_v30 }
 0x1ff   : > { %2978 = vst.msk [vmem:[%s4527_s11 + $0x3a8] sm:$0xff] %vm2860_vm3, %v2721_v31  ;;  %3106 = vst.msk [vmem:[%s4527_s11 + $0x7a8] sm:$0xff] %vm2860_vm3, %v2849_v32  ;;  %v3757_v33 = vpop.f32.mrb[120].mxu0  ;;  %v3885_v34 = vpop.f32.mrb[120].mxu1 }
 0x200   : > { %v2070_v35 = vadd.f32 %v4924_v53, %v3757_v33  ;;  %v2582_v36 = vadd.f32 %v4924_v53, %v3885_v34  ;;  %v2061_v37 = vpop.f32.mrb[121].mxu0  ;;  %v2573_v38 = vpop.f32.mrb[121].mxu1 }
 0x201   : > { %v2062_v39 = vadd.f32 %v4924_v53, %v2061_v37  ;;  %v2574_v40 = vadd.f32 %v4924_v53, %v2573_v38  ;;  %v3758_v41 = vpop.f32.mrb[122].mxu0  ;;  %v3886_v42 = vpop.f32.mrb[122].mxu1 }
 0x202   : > { %v2726_v43 = vmax.f32 %v2070_v35, 0.0  ;;  %v2854_v44 = vmax.f32 %v2582_v36, 0.0  ;;  %v2073_v45 = vadd.f32 %v4924_v53, %v3758_v41  ;;  %v2585_v46 = vadd.f32 %v4924_v53, %v3886_v42  ;;  %v2064_v47 = vpop.f32.mrb[123].mxu0  ;;  %v2576_v48 = vpop.f32.mrb[123].mxu1 }
 0x203   : > { %v2724_v49 = vmax.f32 %v2062_v39, 0.0  ;;  %v2852_v50 = vmax.f32 %v2574_v40, 0.0  ;;  %v2065_v51 = vadd.f32 %v4924_v53, %v2064_v47  ;;  %v2577_v52 = vadd.f32 %v4924_v53, %v2576_v48 }
 0x204   : > { %2983 = vst.msk [vmem:[%s4527_s11 + $0x3d0] sm:$0xff] %vm2860_vm3, %v2726_v43  ;;  %3111 = vst.msk [vmem:[%s4527_s11 + $0x7d0] sm:$0xff] %vm2860_vm3, %v2854_v44  ;;  %v2727_v54 = vmax.f32 %v2073_v45, 0.0  ;;  %v2855_v55 = vmax.f32 %v2585_v46, 0.0 }
 0x205   : > { %2981 = vst.msk [vmem:[%s4527_s11 + $0x3c0] sm:$0xff] %vm2860_vm3, %v2724_v49  ;;  %3109 = vst.msk [vmem:[%s4527_s11 + $0x7c0] sm:$0xff] %vm2860_vm3, %v2852_v50  ;;  %v2725_v56 = vmax.f32 %v2065_v51, 0.0  ;;  %v2853_v57 = vmax.f32 %v2577_v52, 0.0 }
 0x206   : > { %2984 = vst.msk [vmem:[%s4527_s11 + $0x3d8] sm:$0xff] %vm2860_vm3, %v2727_v54  ;;  %3112 = vst.msk [vmem:[%s4527_s11 + $0x7d8] sm:$0xff] %vm2860_vm3, %v2855_v55 }
 0x207   : > { %2982 = vst.msk [vmem:[%s4527_s11 + $0x3c8] sm:$0xff] %vm2860_vm3, %v2725_v56  ;;  %3110 = vst.msk [vmem:[%s4527_s11 + $0x7c8] sm:$0xff] %vm2860_vm3, %v2853_v57  ;;  %v3761_v53 = vpop.f32.mrb[124].mxu0  ;;  %v3889_v58 = vpop.f32.mrb[124].mxu1 }
 0x208   : > { %v2086_v60 = vadd.f32 %v4081_v59, %v3761_v53  ;;  %v2598_v61 = vadd.f32 %v4081_v59, %v3889_v58  ;;  %v2077_v62 = vpop.f32.mrb[125].mxu0  ;;  %v2589_v63 = vpop.f32.mrb[125].mxu1 }
 0x209   : > { %v2078_v0 = vadd.f32 %v4081_v59, %v2077_v62  ;;  %v2590_v1 = vadd.f32 %v4081_v59, %v2589_v63  ;;  %v3762_v2 = vpop.f32.mrb[126].mxu0  ;;  %v3890_v3 = vpop.f32.mrb[126].mxu1 }
 0x20a   : > { %v2730_v4 = vmax.f32 %v2086_v60, 0.0  ;;  %v2858_v5 = vmax.f32 %v2598_v61, 0.0  ;;  %v2089_v6 = vadd.f32 %v4081_v59, %v3762_v2  ;;  %v2601_v7 = vadd.f32 %v4081_v59, %v3890_v3  ;;  %v2080_v8 = vpop.f32.mrb[127].mxu0  ;;  %v2592_v9 = vpop.f32.mrb[127].mxu1 }
 0x20b   : > { %v2728_v10 = vmax.f32 %v2078_v0, 0.0  ;;  %v2856_v11 = vmax.f32 %v2590_v1, 0.0  ;;  %v2081_v12 = vadd.f32 %v4081_v59, %v2080_v8  ;;  %v2593_v13 = vadd.f32 %v4081_v59, %v2592_v9 }
 0x20c   : > { %2987 = vst.msk [vmem:[%s4527_s11 + $0x3f0] sm:$0xff] %vm2860_vm3, %v2730_v4  ;;  %3115 = vst.msk [vmem:[%s4527_s11 + $0x7f0] sm:$0xff] %vm2860_vm3, %v2858_v5  ;;  %v2731_v14 = vmax.f32 %v2089_v6, 0.0  ;;  %v2859_v15 = vmax.f32 %v2601_v7, 0.0 }
 0x20d   : > { %2985 = vst.msk [vmem:[%s4527_s11 + $0x3e0] sm:$0xff] %vm2860_vm3, %v2728_v10  ;;  %3113 = vst.msk [vmem:[%s4527_s11 + $0x7e0] sm:$0xff] %vm2860_vm3, %v2856_v11  ;;  %v2729_v16 = vmax.f32 %v2081_v12, 0.0  ;;  %v2857_v17 = vmax.f32 %v2593_v13, 0.0 }
 0x20e   : > { %2988 = vst.msk [vmem:[%s4527_s11 + $0x3f8] sm:$0xff] %vm2860_vm3, %v2731_v14  ;;  %3116 = vst.msk [vmem:[%s4527_s11 + $0x7f8] sm:$0xff] %vm2860_vm3, %v2859_v15 }
 0x20f   : > { %2986 = vst.msk [vmem:[%s4527_s11 + $0x3e8] sm:$0xff] %vm2860_vm3, %v2729_v16  ;;  %3114 = vst.msk [vmem:[%s4527_s11 + $0x7e8] sm:$0xff] %vm2860_vm3, %v2857_v17 }
 0x210 PF: > { %s16_s17 = sadd.s32 1, %s4162_s17   ;;  %s5354_s12 = smov %s4146_s13 }
 0x211   : > { %p13_p9 = scmp.ge.s32.totalorder %s16_s17, 27   ;;  %s5355_s13 = smov %s4150_s14 }
 0x212   : > { %s5356_s14 = smov %s4237_s24  ;;  %s5357_s15 = smov %s4158_s16 }
 0x213   : > { %s5358_s16 = smov %s5360_s19  ;;  %15 = sbr.rel (!%p13_p9) target bundleno = 4 (0x4), region = 78 }
 0x21a   :  { %3145 = vsyncpa [#allocation3], 1 }
 0x21b   :  { %3147 = vsyncpa [#allocation3 + $0x1], 1 }

</bundles_post_ra>
